<compile_context>
chip_gen: v7x
topology: tpu7x:2x2x1
jax: 0.10.0
libtpu: 0.0.40
codegen_flags: <defaults>
</compile_context>

<pallas_src>
import functools

import jax
import jax.numpy as jnp
from jax.experimental import pallas as pl
from jax.experimental.pallas import tpu as pltpu


# ---------------------------------------------------------------------------
# In-kernel helpers (operate on VMEM-resident values, all math in f32 except
# MXU inputs which are cast to `dtype` / mxu_dtype)
# ---------------------------------------------------------------------------

def _mm(a, b, dtype):
    """MXU matmul: cast inputs to the compute dtype, accumulate in f32."""
    return jnp.dot(a.astype(dtype), b.astype(dtype),
                   preferred_element_type=jnp.float32)


def _layernorm(x, g, b, eps):
    mean = jnp.mean(x, axis=-1, keepdims=True)
    xc = x - mean
    var = jnp.mean(xc * xc, axis=-1, keepdims=True)
    return xc * jax.lax.rsqrt(var + eps) * g + b


def _mha(q, k, v, n_heads, mm):
    """Multi-head scaled-dot-product attention on VMEM-resident activations.

    q: (L, D) f32, k/v: (S, D) f32 -> (L, D) f32.  Heads are statically
    unrolled (no grid steps, no HBM traffic, no XLA transposes).
    """
    _, D = q.shape
    Dh = D // n_heads
    scale = 1.0 / (Dh ** 0.5)
    outs = []
    for h in range(n_heads):
        sl = slice(h * Dh, (h + 1) * Dh)
        qh = q[:, sl] * scale                 # fold scale into q (L*Dh elems)
        kh = k[:, sl]
        vh = v[:, sl]
        s = mm(qh, kh.T)                      # (L, S), f32 accumulation
        m = jnp.max(s, axis=-1, keepdims=True)
        p = jnp.exp(s - m)
        # approx reciprocal -> EUP slot (otherwise idle), frees VALU slots
        p = p * pl.reciprocal(jnp.sum(p, axis=-1, keepdims=True), approx=True)
        outs.append(mm(p, vh))                # (L, Dh)
    return jnp.concatenate(outs, axis=-1)     # (L, D)


# ---------------------------------------------------------------------------
# Fused decoder-layer kernel (one grid step = one batch element)
# ---------------------------------------------------------------------------

def _decoder_layer_kernel(
        x_ref, cross_ref,
        sa_wqkv, sa_bqkv, sa_wo, sa_bo,
        ca_wq, ca_bq, ca_wkv, ca_bkv, ca_wo, ca_bo,
        w1, b1, w2, b2,
        ln1_g, ln1_b, ln2_g, ln2_b, ln3_g, ln3_b,
        o_ref, *, n_heads, eps, mxu_dtype):
    mm = functools.partial(_mm, dtype=mxu_dtype)
    f32 = jnp.float32
    D = x_ref.shape[-1]

    x = x_ref[0].astype(f32)            # (L, D)
    cross = cross_ref[0].astype(f32)    # (S, D)

    # ----- self attention: fused QKV projection -----
    qkv = mm(x, sa_wqkv[...]) + sa_bqkv[...].astype(f32)            # (L, 3D)
    q, k, v = qkv[:, :D], qkv[:, D:2 * D], qkv[:, 2 * D:]
    sa = mm(_mha(q, k, v, n_heads, mm), sa_wo[...]) + sa_bo[...].astype(f32)
    x = _layernorm(x + sa, ln1_g[...].astype(f32), ln1_b[...].astype(f32), eps)

    # ----- cross attention: Q from x, fused K/V projection from cross -----
    q = mm(x, ca_wq[...]) + ca_bq[...].astype(f32)                  # (L, D)
    kv = mm(cross, ca_wkv[...]) + ca_bkv[...].astype(f32)           # (S, 2D)
    k, v = kv[:, :D], kv[:, D:]
    ca = mm(_mha(q, k, v, n_heads, mm), ca_wo[...]) + ca_bo[...].astype(f32)
    x = _layernorm(x + ca, ln2_g[...].astype(f32), ln2_b[...].astype(f32), eps)

    # ----- position-wise FFN (Conv1d kernel_size=1 == Linear), ReLU -----
    h = jnp.maximum(mm(x, w1[...]) + b1[...].astype(f32), 0.0)
    y = mm(h, w2[...]) + b2[...].astype(f32)
    out = _layernorm(x + y, ln3_g[...].astype(f32), ln3_b[...].astype(f32), eps)

    o_ref[0] = out.astype(o_ref.dtype)


def decoder_layer(x, cross, params, n_heads, eps=1e-5, mxu_dtype=jnp.bfloat16):
    """x: (B, L, D), cross: (B, S, D) -> (B, L, D).  Single fused pallas_call."""
    B, L, D = x.shape
    _, S, _ = cross.shape

    def vec(a):                       # (N,) -> (1, N): 2-D lane-major row
        return a.reshape(1, -1)

    weights = [
        params["sa_wqkv"], vec(params["sa_bqkv"]),
        params["sa_wo"], vec(params["sa_bo"]),
        params["ca_wq"], vec(params["ca_bq"]),
        params["ca_wkv"], vec(params["ca_bkv"]),
        params["ca_wo"], vec(params["ca_bo"]),
        params["w1"], vec(params["b1"]),
        params["w2"], vec(params["b2"]),
        vec(params["ln1_g"]), vec(params["ln1_b"]),
        vec(params["ln2_g"]), vec(params["ln2_b"]),
        vec(params["ln3_g"]), vec(params["ln3_b"]),
    ]

    def full_spec(a):                 # full-block weight, same tile every step
        return pl.BlockSpec(a.shape, lambda b: (0, 0))

    in_specs = ([pl.BlockSpec((1, L, D), lambda b: (b, 0, 0)),
                 pl.BlockSpec((1, S, D), lambda b: (b, 0, 0))]
                + [full_spec(w) for w in weights])

    kernel = functools.partial(_decoder_layer_kernel, n_heads=n_heads, eps=eps,
                               mxu_dtype=mxu_dtype)

    return pl.pallas_call(
        kernel,
        out_shape=jax.ShapeDtypeStruct((B, L, D), x.dtype),
        grid=(B,),
        in_specs=in_specs,
        out_specs=pl.BlockSpec((1, L, D), lambda b: (b, 0, 0)),
        compiler_params=pltpu.CompilerParams(
            # batch axis is independent -> shard across the 2 TCs on v7x
            dimension_semantics=("parallel",),
        ),
    )(x, cross, *weights)


# ---------------------------------------------------------------------------
# Pure-JAX reference (mirrors the kernel's bf16-MXU / f32-accumulate math)
# ---------------------------------------------------------------------------

def decoder_layer_ref(x, cross, params, n_heads, eps=1e-5, mxu_dtype=jnp.bfloat16):
    def mm(a, b):
        return jnp.dot(a.astype(mxu_dtype), b.astype(mxu_dtype),
                       preferred_element_type=jnp.float32)

    def ln(v, g, b):
        mean = v.mean(-1, keepdims=True)
        var = ((v - mean) ** 2).mean(-1, keepdims=True)
        return (v - mean) * jax.lax.rsqrt(var + eps) * g + b

    def mha(q, k, v):
        B, L, D = q.shape
        S = k.shape[1]
        Dh = D // n_heads
        scale = 1.0 / (Dh ** 0.5)
        qh = (q * scale).reshape(B, L, n_heads, Dh).transpose(0, 2, 1, 3)
        kh = k.reshape(B, S, n_heads, Dh).transpose(0, 2, 1, 3)
        vh = v.reshape(B, S, n_heads, Dh).transpose(0, 2, 1, 3)
        s = jnp.einsum("bhld,bhsd->bhls", qh.astype(mxu_dtype),
                       kh.astype(mxu_dtype), preferred_element_type=jnp.float32)
        p = jax.nn.softmax(s, axis=-1)
        o = jnp.einsum("bhls,bhsd->bhld", p.astype(mxu_dtype),
                       vh.astype(mxu_dtype), preferred_element_type=jnp.float32)
        return o.transpose(0, 2, 1, 3).reshape(B, L, D)

    B, L, D = x.shape
    x = x.astype(jnp.float32)
    cross = cross.astype(jnp.float32)

    qkv = mm(x, params["sa_wqkv"]) + params["sa_bqkv"]
    q, k, v = qkv[..., :D], qkv[..., D:2 * D], qkv[..., 2 * D:]
    sa = mm(mha(q, k, v), params["sa_wo"]) + params["sa_bo"]
    x = ln(x + sa, params["ln1_g"], params["ln1_b"])

    q = mm(x, params["ca_wq"]) + params["ca_bq"]
    kv = mm(cross, params["ca_wkv"]) + params["ca_bkv"]
    k, v = kv[..., :D], kv[..., D:]
    ca = mm(mha(q, k, v), params["ca_wo"]) + params["ca_bo"]
    x = ln(x + ca, params["ln2_g"], params["ln2_b"])

    h = jnp.maximum(mm(x, params["w1"]) + params["b1"], 0.0)
    y = mm(h, params["w2"]) + params["b2"]
    return ln(x + y, params["ln3_g"], params["ln3_b"])


# ---------------------------------------------------------------------------
# Deterministic parameter construction (weights bf16, biases / LN params f32)
# ---------------------------------------------------------------------------

def make_params(key, d_model, d_ff, w_dtype=jnp.bfloat16):
    ks = jax.random.split(key, 7)

    def w(k, shape):
        return (jax.random.normal(k, shape, jnp.float32) * 0.05).astype(w_dtype)

    zeros = lambda n: jnp.zeros((n,), jnp.float32)
    ones = lambda n: jnp.ones((n,), jnp.float32)
    return {
        # self-attention: fused (D, 3D) = [Wq | Wk | Wv]
        "sa_wqkv": w(ks[0], (d_model, 3 * d_model)),
        "sa_bqkv": zeros(3 * d_model),
        "sa_wo": w(ks[1], (d_model, d_model)),
        "sa_bo": zeros(d_model),
        # cross-attention: Q from x, fused (D, 2D) = [Wk | Wv] from cross
        "ca_wq": w(ks[2], (d_model, d_model)),
        "ca_bq": zeros(d_model),
        "ca_wkv": w(ks[3], (d_model, 2 * d_model)),
        "ca_bkv": zeros(2 * d_model),
        "ca_wo": w(ks[4], (d_model, d_model)),
        "ca_bo": zeros(d_model),
        # conv1: (d_ff, d_model, 1) -> stored (d_model, d_ff); conv2 likewise
        "w1": w(ks[5], (d_model, d_ff)),
        "b1": zeros(d_ff),
        "w2": w(ks[6], (d_ff, d_model)),
        "b2": zeros(d_model),
        "ln1_g": ones(d_model), "ln1_b": zeros(d_model),
        "ln2_g": ones(d_model), "ln2_b": zeros(d_model),
        "ln3_g": ones(d_model), "ln3_b": zeros(d_model),
    }


if __name__ == "__main__":
    B, L, S = 2, 8, 12            # decoder seq len L, encoder (cross) seq len S
    d_model, n_heads = 32, 4
    d_ff = 4 * d_model            # DecoderLayer default d_ff = 4 * d_model

    key = jax.random.PRNGKey(0)
    kx, kc, kp = jax.random.split(key, 3)
    x = jax.random.normal(kx, (B, L, d_model), jnp.float32)
    cross = jax.random.normal(kc, (B, S, d_model), jnp.float32)
    params = make_params(kp, d_model, d_ff)

    fn = jax.jit(functools.partial(decoder_layer, n_heads=n_heads))
    out = jax.block_until_ready(fn(x, cross, params))

    assert out.shape == (B, L, d_model), out.shape
    assert bool(jnp.all(jnp.isfinite(out)))

    ref = decoder_layer_ref(x, cross, params, n_heads)
    assert jnp.allclose(out, ref, atol=2e-2, rtol=2e-2), \
        float(jnp.max(jnp.abs(out - ref)))

    print("KERNEL_OK")
</pallas_src>

<mosaic_0001>
module attributes {stable_mosaic.version = 11 : i64} {
  func.func @_decoder_layer_kernel(%arg0: i32, %arg1: memref<1x8x32xf32, #tpu.memory_space<vmem>>, %arg2: memref<1x12x32xf32, #tpu.memory_space<vmem>>, %arg3: memref<32x96xbf16, #tpu.memory_space<vmem>>, %arg4: memref<1x96xf32, #tpu.memory_space<vmem>>, %arg5: memref<32x32xbf16, #tpu.memory_space<vmem>>, %arg6: memref<1x32xf32, #tpu.memory_space<vmem>>, %arg7: memref<32x32xbf16, #tpu.memory_space<vmem>>, %arg8: memref<1x32xf32, #tpu.memory_space<vmem>>, %arg9: memref<32x64xbf16, #tpu.memory_space<vmem>>, %arg10: memref<1x64xf32, #tpu.memory_space<vmem>>, %arg11: memref<32x32xbf16, #tpu.memory_space<vmem>>, %arg12: memref<1x32xf32, #tpu.memory_space<vmem>>, %arg13: memref<32x128xbf16, #tpu.memory_space<vmem>>, %arg14: memref<1x128xf32, #tpu.memory_space<vmem>>, %arg15: memref<128x32xbf16, #tpu.memory_space<vmem>>, %arg16: memref<1x32xf32, #tpu.memory_space<vmem>>, %arg17: memref<1x32xf32, #tpu.memory_space<vmem>>, %arg18: memref<1x32xf32, #tpu.memory_space<vmem>>, %arg19: memref<1x32xf32, #tpu.memory_space<vmem>>, %arg20: memref<1x32xf32, #tpu.memory_space<vmem>>, %arg21: memref<1x32xf32, #tpu.memory_space<vmem>>, %arg22: memref<1x32xf32, #tpu.memory_space<vmem>>, %arg23: memref<1x8x32xf32, #tpu.memory_space<vmem>>) attributes {dimension_semantics = [#tpu.dimension_semantics<parallel>], iteration_bounds = array<i64: 2>, scalar_prefetch = 0 : i64, scratch_operands = 0 : i64, tpu.core_type = #tpu.core_type<tc>, window_params = [{transform_indices = @transform_0, window_bounds = array<i64: 1, 8, 32>}, {transform_indices = @transform_1, window_bounds = array<i64: 1, 12, 32>}, {pipeline_mode = #tpu.pipeline_mode<synchronous>, transform_indices = @transform_2, window_bounds = array<i64: 32, 96>}, {pipeline_mode = #tpu.pipeline_mode<synchronous>, transform_indices = @transform_3, window_bounds = array<i64: 1, 96>}, {pipeline_mode = #tpu.pipeline_mode<synchronous>, transform_indices = @transform_4, window_bounds = array<i64: 32, 32>}, {pipeline_mode = #tpu.pipeline_mode<synchronous>, transform_indices = @transform_5, window_bounds = array<i64: 1, 32>}, {pipeline_mode = #tpu.pipeline_mode<synchronous>, transform_indices = @transform_6, window_bounds = array<i64: 32, 32>}, {pipeline_mode = #tpu.pipeline_mode<synchronous>, transform_indices = @transform_7, window_bounds = array<i64: 1, 32>}, {pipeline_mode = #tpu.pipeline_mode<synchronous>, transform_indices = @transform_8, window_bounds = array<i64: 32, 64>}, {pipeline_mode = #tpu.pipeline_mode<synchronous>, transform_indices = @transform_9, window_bounds = array<i64: 1, 64>}, {pipeline_mode = #tpu.pipeline_mode<synchronous>, transform_indices = @transform_10, window_bounds = array<i64: 32, 32>}, {pipeline_mode = #tpu.pipeline_mode<synchronous>, transform_indices = @transform_11, window_bounds = array<i64: 1, 32>}, {pipeline_mode = #tpu.pipeline_mode<synchronous>, transform_indices = @transform_12, window_bounds = array<i64: 32, 128>}, {pipeline_mode = #tpu.pipeline_mode<synchronous>, transform_indices = @transform_13, window_bounds = array<i64: 1, 128>}, {pipeline_mode = #tpu.pipeline_mode<synchronous>, transform_indices = @transform_14, window_bounds = array<i64: 128, 32>}, {pipeline_mode = #tpu.pipeline_mode<synchronous>, transform_indices = @transform_15, window_bounds = array<i64: 1, 32>}, {pipeline_mode = #tpu.pipeline_mode<synchronous>, transform_indices = @transform_16, window_bounds = array<i64: 1, 32>}, {pipeline_mode = #tpu.pipeline_mode<synchronous>, transform_indices = @transform_17, window_bounds = array<i64: 1, 32>}, {pipeline_mode = #tpu.pipeline_mode<synchronous>, transform_indices = @transform_18, window_bounds = array<i64: 1, 32>}, {pipeline_mode = #tpu.pipeline_mode<synchronous>, transform_indices = @transform_19, window_bounds = array<i64: 1, 32>}, {pipeline_mode = #tpu.pipeline_mode<synchronous>, transform_indices = @transform_20, window_bounds = array<i64: 1, 32>}, {pipeline_mode = #tpu.pipeline_mode<synchronous>, transform_indices = @transform_21, window_bounds = array<i64: 1, 32>}, {transform_indices = @transform_22, window_bounds = array<i64: 1, 8, 32>}]} {
    %c0 = arith.constant 0 : index
    %c0_0 = arith.constant 0 : index
    %c0_1 = arith.constant 0 : index
    %0 = vector.load %arg1[%c0, %c0_0, %c0_1] : memref<1x8x32xf32, #tpu.memory_space<vmem>>, vector<1x8x32xf32>
    %1 = vector.shape_cast %0 : vector<1x8x32xf32> to vector<8x32xf32>
    %c0_2 = arith.constant 0 : index
    %c0_3 = arith.constant 0 : index
    %c0_4 = arith.constant 0 : index
    %2 = vector.load %arg2[%c0_2, %c0_3, %c0_4] : memref<1x12x32xf32, #tpu.memory_space<vmem>>, vector<1x12x32xf32>
    %3 = vector.shape_cast %2 : vector<1x12x32xf32> to vector<12x32xf32>
    %c0_5 = arith.constant 0 : index
    %c0_6 = arith.constant 0 : index
    %4 = vector.load %arg3[%c0_5, %c0_6] : memref<32x96xbf16, #tpu.memory_space<vmem>>, vector<32x96xbf16>
    %5 = arith.truncf %1 : vector<8x32xf32> to vector<8x32xbf16>
    %cst = arith.constant dense<0.000000e+00> : vector<8x96xf32>
    %6 = tpu.matmul %5, %4, %cst {dimension_numbers = #tpu.dot_dimension_numbers<[1], [0], [0], [1], [0, 0, 1, 1], [], []>} : vector<8x32xbf16>, vector<32x96xbf16>, vector<8x96xf32> -> vector<8x96xf32>
    %c0_7 = arith.constant 0 : index
    %c0_8 = arith.constant 0 : index
    %7 = vector.load %arg4[%c0_7, %c0_8] : memref<1x96xf32, #tpu.memory_space<vmem>>, vector<1x96xf32>
    %8 = vector.broadcast %7 : vector<1x96xf32> to vector<8x96xf32>
    %9 = arith.addf %6, %8 : vector<8x96xf32>
    %10 = vector.extract_strided_slice %9 {offsets = [0, 0], sizes = [8, 32], strides = [1, 1]} : vector<8x96xf32> to vector<8x32xf32>
    %11 = vector.extract_strided_slice %9 {offsets = [0, 32], sizes = [8, 32], strides = [1, 1]} : vector<8x96xf32> to vector<8x32xf32>
    %12 = vector.extract_strided_slice %9 {offsets = [0, 64], sizes = [8, 32], strides = [1, 1]} : vector<8x96xf32> to vector<8x32xf32>
    %13 = vector.extract_strided_slice %10 {offsets = [0, 0], sizes = [8, 8], strides = [1, 1]} : vector<8x32xf32> to vector<8x8xf32>
    %cst_9 = arith.constant 0.353553385 : f32
    %14 = vector.broadcast %cst_9 : f32 to vector<8x8xf32>
    %15 = arith.mulf %13, %14 : vector<8x8xf32>
    %16 = vector.extract_strided_slice %11 {offsets = [0, 0], sizes = [8, 8], strides = [1, 1]} : vector<8x32xf32> to vector<8x8xf32>
    %17 = vector.extract_strided_slice %12 {offsets = [0, 0], sizes = [8, 8], strides = [1, 1]} : vector<8x32xf32> to vector<8x8xf32>
    %18 = tpu.transpose %16, [1, 0] : vector<8x8xf32> -> vector<8x8xf32>
    %19 = arith.truncf %15 : vector<8x8xf32> to vector<8x8xbf16>
    %20 = arith.truncf %18 : vector<8x8xf32> to vector<8x8xbf16>
    %cst_10 = arith.constant dense<0.000000e+00> : vector<8x8xf32>
    %21 = tpu.matmul %19, %20, %cst_10 {dimension_numbers = #tpu.dot_dimension_numbers<[1], [0], [0], [1], [0, 0, 1, 1], [], []>} : vector<8x8xbf16>, vector<8x8xbf16>, vector<8x8xf32> -> vector<8x8xf32>
    %cst_11 = arith.constant dense<0xFF800000> : vector<8xf32>
    %22 = vector.multi_reduction <maximumf>, %21, %cst_11 [1] : vector<8x8xf32> to vector<8xf32>
    %23 = vector.shape_cast %22 : vector<8xf32> to vector<8x1xf32>
    %24 = vector.broadcast %23 : vector<8x1xf32> to vector<8x8xf32>
    %25 = arith.subf %21, %24 : vector<8x8xf32>
    %26 = math.exp %25 : vector<8x8xf32>
    %cst_12 = arith.constant dense<0.000000e+00> : vector<8xf32>
    %27 = vector.multi_reduction <add>, %26, %cst_12 [1] : vector<8x8xf32> to vector<8xf32>
    %28 = vector.shape_cast %27 : vector<8xf32> to vector<8x1xf32>
    %29 = tpu.reciprocal %28 {approx = true} : vector<8x1xf32> -> vector<8x1xf32>
    %30 = vector.broadcast %29 : vector<8x1xf32> to vector<8x8xf32>
    %31 = arith.mulf %26, %30 : vector<8x8xf32>
    %32 = arith.truncf %31 : vector<8x8xf32> to vector<8x8xbf16>
    %33 = arith.truncf %17 : vector<8x8xf32> to vector<8x8xbf16>
    %cst_13 = arith.constant dense<0.000000e+00> : vector<8x8xf32>
    %34 = tpu.matmul %32, %33, %cst_13 {dimension_numbers = #tpu.dot_dimension_numbers<[1], [0], [0], [1], [0, 0, 1, 1], [], []>} : vector<8x8xbf16>, vector<8x8xbf16>, vector<8x8xf32> -> vector<8x8xf32>
    %35 = vector.extract_strided_slice %10 {offsets = [0, 8], sizes = [8, 8], strides = [1, 1]} : vector<8x32xf32> to vector<8x8xf32>
    %cst_14 = arith.constant 0.353553385 : f32
    %36 = vector.broadcast %cst_14 : f32 to vector<8x8xf32>
    %37 = arith.mulf %35, %36 : vector<8x8xf32>
    %38 = vector.extract_strided_slice %11 {offsets = [0, 8], sizes = [8, 8], strides = [1, 1]} : vector<8x32xf32> to vector<8x8xf32>
    %39 = vector.extract_strided_slice %12 {offsets = [0, 8], sizes = [8, 8], strides = [1, 1]} : vector<8x32xf32> to vector<8x8xf32>
    %40 = tpu.transpose %38, [1, 0] : vector<8x8xf32> -> vector<8x8xf32>
    %41 = arith.truncf %37 : vector<8x8xf32> to vector<8x8xbf16>
    %42 = arith.truncf %40 : vector<8x8xf32> to vector<8x8xbf16>
    %cst_15 = arith.constant dense<0.000000e+00> : vector<8x8xf32>
    %43 = tpu.matmul %41, %42, %cst_15 {dimension_numbers = #tpu.dot_dimension_numbers<[1], [0], [0], [1], [0, 0, 1, 1], [], []>} : vector<8x8xbf16>, vector<8x8xbf16>, vector<8x8xf32> -> vector<8x8xf32>
    %cst_16 = arith.constant dense<0xFF800000> : vector<8xf32>
    %44 = vector.multi_reduction <maximumf>, %43, %cst_16 [1] : vector<8x8xf32> to vector<8xf32>
    %45 = vector.shape_cast %44 : vector<8xf32> to vector<8x1xf32>
    %46 = vector.broadcast %45 : vector<8x1xf32> to vector<8x8xf32>
    %47 = arith.subf %43, %46 : vector<8x8xf32>
    %48 = math.exp %47 : vector<8x8xf32>
    %cst_17 = arith.constant dense<0.000000e+00> : vector<8xf32>
    %49 = vector.multi_reduction <add>, %48, %cst_17 [1] : vector<8x8xf32> to vector<8xf32>
    %50 = vector.shape_cast %49 : vector<8xf32> to vector<8x1xf32>
    %51 = tpu.reciprocal %50 {approx = true} : vector<8x1xf32> -> vector<8x1xf32>
    %52 = vector.broadcast %51 : vector<8x1xf32> to vector<8x8xf32>
    %53 = arith.mulf %48, %52 : vector<8x8xf32>
    %54 = arith.truncf %53 : vector<8x8xf32> to vector<8x8xbf16>
    %55 = arith.truncf %39 : vector<8x8xf32> to vector<8x8xbf16>
    %cst_18 = arith.constant dense<0.000000e+00> : vector<8x8xf32>
    %56 = tpu.matmul %54, %55, %cst_18 {dimension_numbers = #tpu.dot_dimension_numbers<[1], [0], [0], [1], [0, 0, 1, 1], [], []>} : vector<8x8xbf16>, vector<8x8xbf16>, vector<8x8xf32> -> vector<8x8xf32>
    %57 = vector.extract_strided_slice %10 {offsets = [0, 16], sizes = [8, 8], strides = [1, 1]} : vector<8x32xf32> to vector<8x8xf32>
    %cst_19 = arith.constant 0.353553385 : f32
    %58 = vector.broadcast %cst_19 : f32 to vector<8x8xf32>
    %59 = arith.mulf %57, %58 : vector<8x8xf32>
    %60 = vector.extract_strided_slice %11 {offsets = [0, 16], sizes = [8, 8], strides = [1, 1]} : vector<8x32xf32> to vector<8x8xf32>
    %61 = vector.extract_strided_slice %12 {offsets = [0, 16], sizes = [8, 8], strides = [1, 1]} : vector<8x32xf32> to vector<8x8xf32>
    %62 = tpu.transpose %60, [1, 0] : vector<8x8xf32> -> vector<8x8xf32>
    %63 = arith.truncf %59 : vector<8x8xf32> to vector<8x8xbf16>
    %64 = arith.truncf %62 : vector<8x8xf32> to vector<8x8xbf16>
    %cst_20 = arith.constant dense<0.000000e+00> : vector<8x8xf32>
    %65 = tpu.matmul %63, %64, %cst_20 {dimension_numbers = #tpu.dot_dimension_numbers<[1], [0], [0], [1], [0, 0, 1, 1], [], []>} : vector<8x8xbf16>, vector<8x8xbf16>, vector<8x8xf32> -> vector<8x8xf32>
    %cst_21 = arith.constant dense<0xFF800000> : vector<8xf32>
    %66 = vector.multi_reduction <maximumf>, %65, %cst_21 [1] : vector<8x8xf32> to vector<8xf32>
    %67 = vector.shape_cast %66 : vector<8xf32> to vector<8x1xf32>
    %68 = vector.broadcast %67 : vector<8x1xf32> to vector<8x8xf32>
    %69 = arith.subf %65, %68 : vector<8x8xf32>
    %70 = math.exp %69 : vector<8x8xf32>
    %cst_22 = arith.constant dense<0.000000e+00> : vector<8xf32>
    %71 = vector.multi_reduction <add>, %70, %cst_22 [1] : vector<8x8xf32> to vector<8xf32>
    %72 = vector.shape_cast %71 : vector<8xf32> to vector<8x1xf32>
    %73 = tpu.reciprocal %72 {approx = true} : vector<8x1xf32> -> vector<8x1xf32>
    %74 = vector.broadcast %73 : vector<8x1xf32> to vector<8x8xf32>
    %75 = arith.mulf %70, %74 : vector<8x8xf32>
    %76 = arith.truncf %75 : vector<8x8xf32> to vector<8x8xbf16>
    %77 = arith.truncf %61 : vector<8x8xf32> to vector<8x8xbf16>
    %cst_23 = arith.constant dense<0.000000e+00> : vector<8x8xf32>
    %78 = tpu.matmul %76, %77, %cst_23 {dimension_numbers = #tpu.dot_dimension_numbers<[1], [0], [0], [1], [0, 0, 1, 1], [], []>} : vector<8x8xbf16>, vector<8x8xbf16>, vector<8x8xf32> -> vector<8x8xf32>
    %79 = vector.extract_strided_slice %10 {offsets = [0, 24], sizes = [8, 8], strides = [1, 1]} : vector<8x32xf32> to vector<8x8xf32>
    %cst_24 = arith.constant 0.353553385 : f32
    %80 = vector.broadcast %cst_24 : f32 to vector<8x8xf32>
    %81 = arith.mulf %79, %80 : vector<8x8xf32>
    %82 = vector.extract_strided_slice %11 {offsets = [0, 24], sizes = [8, 8], strides = [1, 1]} : vector<8x32xf32> to vector<8x8xf32>
    %83 = vector.extract_strided_slice %12 {offsets = [0, 24], sizes = [8, 8], strides = [1, 1]} : vector<8x32xf32> to vector<8x8xf32>
    %84 = tpu.transpose %82, [1, 0] : vector<8x8xf32> -> vector<8x8xf32>
    %85 = arith.truncf %81 : vector<8x8xf32> to vector<8x8xbf16>
    %86 = arith.truncf %84 : vector<8x8xf32> to vector<8x8xbf16>
    %cst_25 = arith.constant dense<0.000000e+00> : vector<8x8xf32>
    %87 = tpu.matmul %85, %86, %cst_25 {dimension_numbers = #tpu.dot_dimension_numbers<[1], [0], [0], [1], [0, 0, 1, 1], [], []>} : vector<8x8xbf16>, vector<8x8xbf16>, vector<8x8xf32> -> vector<8x8xf32>
    %cst_26 = arith.constant dense<0xFF800000> : vector<8xf32>
    %88 = vector.multi_reduction <maximumf>, %87, %cst_26 [1] : vector<8x8xf32> to vector<8xf32>
    %89 = vector.shape_cast %88 : vector<8xf32> to vector<8x1xf32>
    %90 = vector.broadcast %89 : vector<8x1xf32> to vector<8x8xf32>
    %91 = arith.subf %87, %90 : vector<8x8xf32>
    %92 = math.exp %91 : vector<8x8xf32>
    %cst_27 = arith.constant dense<0.000000e+00> : vector<8xf32>
    %93 = vector.multi_reduction <add>, %92, %cst_27 [1] : vector<8x8xf32> to vector<8xf32>
    %94 = vector.shape_cast %93 : vector<8xf32> to vector<8x1xf32>
    %95 = tpu.reciprocal %94 {approx = true} : vector<8x1xf32> -> vector<8x1xf32>
    %96 = vector.broadcast %95 : vector<8x1xf32> to vector<8x8xf32>
    %97 = arith.mulf %92, %96 : vector<8x8xf32>
    %98 = arith.truncf %97 : vector<8x8xf32> to vector<8x8xbf16>
    %99 = arith.truncf %83 : vector<8x8xf32> to vector<8x8xbf16>
    %cst_28 = arith.constant dense<0.000000e+00> : vector<8x8xf32>
    %100 = tpu.matmul %98, %99, %cst_28 {dimension_numbers = #tpu.dot_dimension_numbers<[1], [0], [0], [1], [0, 0, 1, 1], [], []>} : vector<8x8xbf16>, vector<8x8xbf16>, vector<8x8xf32> -> vector<8x8xf32>
    %101 = tpu.concatenate %34, %56, %78, %100 in 1 : vector<8x8xf32>, vector<8x8xf32>, vector<8x8xf32>, vector<8x8xf32> -> vector<8x32xf32>
    %c0_29 = arith.constant 0 : index
    %c0_30 = arith.constant 0 : index
    %102 = vector.load %arg5[%c0_29, %c0_30] : memref<32x32xbf16, #tpu.memory_space<vmem>>, vector<32x32xbf16>
    %103 = arith.truncf %101 : vector<8x32xf32> to vector<8x32xbf16>
    %cst_31 = arith.constant dense<0.000000e+00> : vector<8x32xf32>
    %104 = tpu.matmul %103, %102, %cst_31 {dimension_numbers = #tpu.dot_dimension_numbers<[1], [0], [0], [1], [0, 0, 1, 1], [], []>} : vector<8x32xbf16>, vector<32x32xbf16>, vector<8x32xf32> -> vector<8x32xf32>
    %c0_32 = arith.constant 0 : index
    %c0_33 = arith.constant 0 : index
    %105 = vector.load %arg6[%c0_32, %c0_33] : memref<1x32xf32, #tpu.memory_space<vmem>>, vector<1x32xf32>
    %106 = vector.broadcast %105 : vector<1x32xf32> to vector<8x32xf32>
    %107 = arith.addf %104, %106 : vector<8x32xf32>
    %108 = arith.addf %1, %107 : vector<8x32xf32>
    %c0_34 = arith.constant 0 : index
    %c0_35 = arith.constant 0 : index
    %109 = vector.load %arg17[%c0_34, %c0_35] : memref<1x32xf32, #tpu.memory_space<vmem>>, vector<1x32xf32>
    %c0_36 = arith.constant 0 : index
    %c0_37 = arith.constant 0 : index
    %110 = vector.load %arg18[%c0_36, %c0_37] : memref<1x32xf32, #tpu.memory_space<vmem>>, vector<1x32xf32>
    %cst_38 = arith.constant dense<0.000000e+00> : vector<8xf32>
    %111 = vector.multi_reduction <add>, %108, %cst_38 [1] : vector<8x32xf32> to vector<8xf32>
    %112 = vector.shape_cast %111 : vector<8xf32> to vector<8x1xf32>
    %cst_39 = arith.constant 3.200000e+01 : f32
    %113 = vector.broadcast %cst_39 : f32 to vector<8x1xf32>
    %114 = arith.divf %112, %113 : vector<8x1xf32>
    %115 = vector.broadcast %114 : vector<8x1xf32> to vector<8x32xf32>
    %116 = arith.subf %108, %115 : vector<8x32xf32>
    %117 = arith.mulf %116, %116 : vector<8x32xf32>
    %cst_40 = arith.constant dense<0.000000e+00> : vector<8xf32>
    %118 = vector.multi_reduction <add>, %117, %cst_40 [1] : vector<8x32xf32> to vector<8xf32>
    %119 = vector.shape_cast %118 : vector<8xf32> to vector<8x1xf32>
    %cst_41 = arith.constant 3.200000e+01 : f32
    %120 = vector.broadcast %cst_41 : f32 to vector<8x1xf32>
    %121 = arith.divf %119, %120 : vector<8x1xf32>
    %cst_42 = arith.constant 9.99999974E-6 : f32
    %122 = vector.broadcast %cst_42 : f32 to vector<8x1xf32>
    %123 = arith.addf %121, %122 : vector<8x1xf32>
    %124 = math.rsqrt %123 : vector<8x1xf32>
    %125 = vector.broadcast %124 : vector<8x1xf32> to vector<8x32xf32>
    %126 = arith.mulf %116, %125 : vector<8x32xf32>
    %127 = vector.broadcast %109 : vector<1x32xf32> to vector<8x32xf32>
    %128 = arith.mulf %126, %127 : vector<8x32xf32>
    %129 = vector.broadcast %110 : vector<1x32xf32> to vector<8x32xf32>
    %130 = arith.addf %128, %129 : vector<8x32xf32>
    %c0_43 = arith.constant 0 : index
    %c0_44 = arith.constant 0 : index
    %131 = vector.load %arg7[%c0_43, %c0_44] : memref<32x32xbf16, #tpu.memory_space<vmem>>, vector<32x32xbf16>
    %132 = arith.truncf %130 : vector<8x32xf32> to vector<8x32xbf16>
    %cst_45 = arith.constant dense<0.000000e+00> : vector<8x32xf32>
    %133 = tpu.matmul %132, %131, %cst_45 {dimension_numbers = #tpu.dot_dimension_numbers<[1], [0], [0], [1], [0, 0, 1, 1], [], []>} : vector<8x32xbf16>, vector<32x32xbf16>, vector<8x32xf32> -> vector<8x32xf32>
    %c0_46 = arith.constant 0 : index
    %c0_47 = arith.constant 0 : index
    %134 = vector.load %arg8[%c0_46, %c0_47] : memref<1x32xf32, #tpu.memory_space<vmem>>, vector<1x32xf32>
    %135 = vector.broadcast %134 : vector<1x32xf32> to vector<8x32xf32>
    %136 = arith.addf %133, %135 : vector<8x32xf32>
    %c0_48 = arith.constant 0 : index
    %c0_49 = arith.constant 0 : index
    %137 = vector.load %arg9[%c0_48, %c0_49] : memref<32x64xbf16, #tpu.memory_space<vmem>>, vector<32x64xbf16>
    %138 = arith.truncf %3 : vector<12x32xf32> to vector<12x32xbf16>
    %cst_50 = arith.constant dense<0.000000e+00> : vector<12x64xf32>
    %139 = tpu.matmul %138, %137, %cst_50 {dimension_numbers = #tpu.dot_dimension_numbers<[1], [0], [0], [1], [0, 0, 1, 1], [], []>} : vector<12x32xbf16>, vector<32x64xbf16>, vector<12x64xf32> -> vector<12x64xf32>
    %c0_51 = arith.constant 0 : index
    %c0_52 = arith.constant 0 : index
    %140 = vector.load %arg10[%c0_51, %c0_52] : memref<1x64xf32, #tpu.memory_space<vmem>>, vector<1x64xf32>
    %141 = vector.broadcast %140 : vector<1x64xf32> to vector<12x64xf32>
    %142 = arith.addf %139, %141 : vector<12x64xf32>
    %143 = vector.extract_strided_slice %142 {offsets = [0, 0], sizes = [12, 32], strides = [1, 1]} : vector<12x64xf32> to vector<12x32xf32>
    %144 = vector.extract_strided_slice %142 {offsets = [0, 32], sizes = [12, 32], strides = [1, 1]} : vector<12x64xf32> to vector<12x32xf32>
    %145 = vector.extract_strided_slice %136 {offsets = [0, 0], sizes = [8, 8], strides = [1, 1]} : vector<8x32xf32> to vector<8x8xf32>
    %cst_53 = arith.constant 0.353553385 : f32
    %146 = vector.broadcast %cst_53 : f32 to vector<8x8xf32>
    %147 = arith.mulf %145, %146 : vector<8x8xf32>
    %148 = vector.extract_strided_slice %143 {offsets = [0, 0], sizes = [12, 8], strides = [1, 1]} : vector<12x32xf32> to vector<12x8xf32>
    %149 = vector.extract_strided_slice %144 {offsets = [0, 0], sizes = [12, 8], strides = [1, 1]} : vector<12x32xf32> to vector<12x8xf32>
    %150 = tpu.transpose %148, [1, 0] : vector<12x8xf32> -> vector<8x12xf32>
    %151 = arith.truncf %147 : vector<8x8xf32> to vector<8x8xbf16>
    %152 = arith.truncf %150 : vector<8x12xf32> to vector<8x12xbf16>
    %cst_54 = arith.constant dense<0.000000e+00> : vector<8x12xf32>
    %153 = tpu.matmul %151, %152, %cst_54 {dimension_numbers = #tpu.dot_dimension_numbers<[1], [0], [0], [1], [0, 0, 1, 1], [], []>} : vector<8x8xbf16>, vector<8x12xbf16>, vector<8x12xf32> -> vector<8x12xf32>
    %cst_55 = arith.constant dense<0xFF800000> : vector<8xf32>
    %154 = vector.multi_reduction <maximumf>, %153, %cst_55 [1] : vector<8x12xf32> to vector<8xf32>
    %155 = vector.shape_cast %154 : vector<8xf32> to vector<8x1xf32>
    %156 = vector.broadcast %155 : vector<8x1xf32> to vector<8x12xf32>
    %157 = arith.subf %153, %156 : vector<8x12xf32>
    %158 = math.exp %157 : vector<8x12xf32>
    %cst_56 = arith.constant dense<0.000000e+00> : vector<8xf32>
    %159 = vector.multi_reduction <add>, %158, %cst_56 [1] : vector<8x12xf32> to vector<8xf32>
    %160 = vector.shape_cast %159 : vector<8xf32> to vector<8x1xf32>
    %161 = tpu.reciprocal %160 {approx = true} : vector<8x1xf32> -> vector<8x1xf32>
    %162 = vector.broadcast %161 : vector<8x1xf32> to vector<8x12xf32>
    %163 = arith.mulf %158, %162 : vector<8x12xf32>
    %164 = arith.truncf %163 : vector<8x12xf32> to vector<8x12xbf16>
    %165 = arith.truncf %149 : vector<12x8xf32> to vector<12x8xbf16>
    %cst_57 = arith.constant dense<0.000000e+00> : vector<8x8xf32>
    %166 = tpu.matmul %164, %165, %cst_57 {dimension_numbers = #tpu.dot_dimension_numbers<[1], [0], [0], [1], [0, 0, 1, 1], [], []>} : vector<8x12xbf16>, vector<12x8xbf16>, vector<8x8xf32> -> vector<8x8xf32>
    %167 = vector.extract_strided_slice %136 {offsets = [0, 8], sizes = [8, 8], strides = [1, 1]} : vector<8x32xf32> to vector<8x8xf32>
    %cst_58 = arith.constant 0.353553385 : f32
    %168 = vector.broadcast %cst_58 : f32 to vector<8x8xf32>
    %169 = arith.mulf %167, %168 : vector<8x8xf32>
    %170 = vector.extract_strided_slice %143 {offsets = [0, 8], sizes = [12, 8], strides = [1, 1]} : vector<12x32xf32> to vector<12x8xf32>
    %171 = vector.extract_strided_slice %144 {offsets = [0, 8], sizes = [12, 8], strides = [1, 1]} : vector<12x32xf32> to vector<12x8xf32>
    %172 = tpu.transpose %170, [1, 0] : vector<12x8xf32> -> vector<8x12xf32>
    %173 = arith.truncf %169 : vector<8x8xf32> to vector<8x8xbf16>
    %174 = arith.truncf %172 : vector<8x12xf32> to vector<8x12xbf16>
    %cst_59 = arith.constant dense<0.000000e+00> : vector<8x12xf32>
    %175 = tpu.matmul %173, %174, %cst_59 {dimension_numbers = #tpu.dot_dimension_numbers<[1], [0], [0], [1], [0, 0, 1, 1], [], []>} : vector<8x8xbf16>, vector<8x12xbf16>, vector<8x12xf32> -> vector<8x12xf32>
    %cst_60 = arith.constant dense<0xFF800000> : vector<8xf32>
    %176 = vector.multi_reduction <maximumf>, %175, %cst_60 [1] : vector<8x12xf32> to vector<8xf32>
    %177 = vector.shape_cast %176 : vector<8xf32> to vector<8x1xf32>
    %178 = vector.broadcast %177 : vector<8x1xf32> to vector<8x12xf32>
    %179 = arith.subf %175, %178 : vector<8x12xf32>
    %180 = math.exp %179 : vector<8x12xf32>
    %cst_61 = arith.constant dense<0.000000e+00> : vector<8xf32>
    %181 = vector.multi_reduction <add>, %180, %cst_61 [1] : vector<8x12xf32> to vector<8xf32>
    %182 = vector.shape_cast %181 : vector<8xf32> to vector<8x1xf32>
    %183 = tpu.reciprocal %182 {approx = true} : vector<8x1xf32> -> vector<8x1xf32>
    %184 = vector.broadcast %183 : vector<8x1xf32> to vector<8x12xf32>
    %185 = arith.mulf %180, %184 : vector<8x12xf32>
    %186 = arith.truncf %185 : vector<8x12xf32> to vector<8x12xbf16>
    %187 = arith.truncf %171 : vector<12x8xf32> to vector<12x8xbf16>
    %cst_62 = arith.constant dense<0.000000e+00> : vector<8x8xf32>
    %188 = tpu.matmul %186, %187, %cst_62 {dimension_numbers = #tpu.dot_dimension_numbers<[1], [0], [0], [1], [0, 0, 1, 1], [], []>} : vector<8x12xbf16>, vector<12x8xbf16>, vector<8x8xf32> -> vector<8x8xf32>
    %189 = vector.extract_strided_slice %136 {offsets = [0, 16], sizes = [8, 8], strides = [1, 1]} : vector<8x32xf32> to vector<8x8xf32>
    %cst_63 = arith.constant 0.353553385 : f32
    %190 = vector.broadcast %cst_63 : f32 to vector<8x8xf32>
    %191 = arith.mulf %189, %190 : vector<8x8xf32>
    %192 = vector.extract_strided_slice %143 {offsets = [0, 16], sizes = [12, 8], strides = [1, 1]} : vector<12x32xf32> to vector<12x8xf32>
    %193 = vector.extract_strided_slice %144 {offsets = [0, 16], sizes = [12, 8], strides = [1, 1]} : vector<12x32xf32> to vector<12x8xf32>
    %194 = tpu.transpose %192, [1, 0] : vector<12x8xf32> -> vector<8x12xf32>
    %195 = arith.truncf %191 : vector<8x8xf32> to vector<8x8xbf16>
    %196 = arith.truncf %194 : vector<8x12xf32> to vector<8x12xbf16>
    %cst_64 = arith.constant dense<0.000000e+00> : vector<8x12xf32>
    %197 = tpu.matmul %195, %196, %cst_64 {dimension_numbers = #tpu.dot_dimension_numbers<[1], [0], [0], [1], [0, 0, 1, 1], [], []>} : vector<8x8xbf16>, vector<8x12xbf16>, vector<8x12xf32> -> vector<8x12xf32>
    %cst_65 = arith.constant dense<0xFF800000> : vector<8xf32>
    %198 = vector.multi_reduction <maximumf>, %197, %cst_65 [1] : vector<8x12xf32> to vector<8xf32>
    %199 = vector.shape_cast %198 : vector<8xf32> to vector<8x1xf32>
    %200 = vector.broadcast %199 : vector<8x1xf32> to vector<8x12xf32>
    %201 = arith.subf %197, %200 : vector<8x12xf32>
    %202 = math.exp %201 : vector<8x12xf32>
    %cst_66 = arith.constant dense<0.000000e+00> : vector<8xf32>
    %203 = vector.multi_reduction <add>, %202, %cst_66 [1] : vector<8x12xf32> to vector<8xf32>
    %204 = vector.shape_cast %203 : vector<8xf32> to vector<8x1xf32>
    %205 = tpu.reciprocal %204 {approx = true} : vector<8x1xf32> -> vector<8x1xf32>
    %206 = vector.broadcast %205 : vector<8x1xf32> to vector<8x12xf32>
    %207 = arith.mulf %202, %206 : vector<8x12xf32>
    %208 = arith.truncf %207 : vector<8x12xf32> to vector<8x12xbf16>
    %209 = arith.truncf %193 : vector<12x8xf32> to vector<12x8xbf16>
    %cst_67 = arith.constant dense<0.000000e+00> : vector<8x8xf32>
    %210 = tpu.matmul %208, %209, %cst_67 {dimension_numbers = #tpu.dot_dimension_numbers<[1], [0], [0], [1], [0, 0, 1, 1], [], []>} : vector<8x12xbf16>, vector<12x8xbf16>, vector<8x8xf32> -> vector<8x8xf32>
    %211 = vector.extract_strided_slice %136 {offsets = [0, 24], sizes = [8, 8], strides = [1, 1]} : vector<8x32xf32> to vector<8x8xf32>
    %cst_68 = arith.constant 0.353553385 : f32
    %212 = vector.broadcast %cst_68 : f32 to vector<8x8xf32>
    %213 = arith.mulf %211, %212 : vector<8x8xf32>
    %214 = vector.extract_strided_slice %143 {offsets = [0, 24], sizes = [12, 8], strides = [1, 1]} : vector<12x32xf32> to vector<12x8xf32>
    %215 = vector.extract_strided_slice %144 {offsets = [0, 24], sizes = [12, 8], strides = [1, 1]} : vector<12x32xf32> to vector<12x8xf32>
    %216 = tpu.transpose %214, [1, 0] : vector<12x8xf32> -> vector<8x12xf32>
    %217 = arith.truncf %213 : vector<8x8xf32> to vector<8x8xbf16>
    %218 = arith.truncf %216 : vector<8x12xf32> to vector<8x12xbf16>
    %cst_69 = arith.constant dense<0.000000e+00> : vector<8x12xf32>
    %219 = tpu.matmul %217, %218, %cst_69 {dimension_numbers = #tpu.dot_dimension_numbers<[1], [0], [0], [1], [0, 0, 1, 1], [], []>} : vector<8x8xbf16>, vector<8x12xbf16>, vector<8x12xf32> -> vector<8x12xf32>
    %cst_70 = arith.constant dense<0xFF800000> : vector<8xf32>
    %220 = vector.multi_reduction <maximumf>, %219, %cst_70 [1] : vector<8x12xf32> to vector<8xf32>
    %221 = vector.shape_cast %220 : vector<8xf32> to vector<8x1xf32>
    %222 = vector.broadcast %221 : vector<8x1xf32> to vector<8x12xf32>
    %223 = arith.subf %219, %222 : vector<8x12xf32>
    %224 = math.exp %223 : vector<8x12xf32>
    %cst_71 = arith.constant dense<0.000000e+00> : vector<8xf32>
    %225 = vector.multi_reduction <add>, %224, %cst_71 [1] : vector<8x12xf32> to vector<8xf32>
    %226 = vector.shape_cast %225 : vector<8xf32> to vector<8x1xf32>
    %227 = tpu.reciprocal %226 {approx = true} : vector<8x1xf32> -> vector<8x1xf32>
    %228 = vector.broadcast %227 : vector<8x1xf32> to vector<8x12xf32>
    %229 = arith.mulf %224, %228 : vector<8x12xf32>
    %230 = arith.truncf %229 : vector<8x12xf32> to vector<8x12xbf16>
    %231 = arith.truncf %215 : vector<12x8xf32> to vector<12x8xbf16>
    %cst_72 = arith.constant dense<0.000000e+00> : vector<8x8xf32>
    %232 = tpu.matmul %230, %231, %cst_72 {dimension_numbers = #tpu.dot_dimension_numbers<[1], [0], [0], [1], [0, 0, 1, 1], [], []>} : vector<8x12xbf16>, vector<12x8xbf16>, vector<8x8xf32> -> vector<8x8xf32>
    %233 = tpu.concatenate %166, %188, %210, %232 in 1 : vector<8x8xf32>, vector<8x8xf32>, vector<8x8xf32>, vector<8x8xf32> -> vector<8x32xf32>
    %c0_73 = arith.constant 0 : index
    %c0_74 = arith.constant 0 : index
    %234 = vector.load %arg11[%c0_73, %c0_74] : memref<32x32xbf16, #tpu.memory_space<vmem>>, vector<32x32xbf16>
    %235 = arith.truncf %233 : vector<8x32xf32> to vector<8x32xbf16>
    %cst_75 = arith.constant dense<0.000000e+00> : vector<8x32xf32>
    %236 = tpu.matmul %235, %234, %cst_75 {dimension_numbers = #tpu.dot_dimension_numbers<[1], [0], [0], [1], [0, 0, 1, 1], [], []>} : vector<8x32xbf16>, vector<32x32xbf16>, vector<8x32xf32> -> vector<8x32xf32>
    %c0_76 = arith.constant 0 : index
    %c0_77 = arith.constant 0 : index
    %237 = vector.load %arg12[%c0_76, %c0_77] : memref<1x32xf32, #tpu.memory_space<vmem>>, vector<1x32xf32>
    %238 = vector.broadcast %237 : vector<1x32xf32> to vector<8x32xf32>
    %239 = arith.addf %236, %238 : vector<8x32xf32>
    %240 = arith.addf %130, %239 : vector<8x32xf32>
    %c0_78 = arith.constant 0 : index
    %c0_79 = arith.constant 0 : index
    %241 = vector.load %arg19[%c0_78, %c0_79] : memref<1x32xf32, #tpu.memory_space<vmem>>, vector<1x32xf32>
    %c0_80 = arith.constant 0 : index
    %c0_81 = arith.constant 0 : index
    %242 = vector.load %arg20[%c0_80, %c0_81] : memref<1x32xf32, #tpu.memory_space<vmem>>, vector<1x32xf32>
    %cst_82 = arith.constant dense<0.000000e+00> : vector<8xf32>
    %243 = vector.multi_reduction <add>, %240, %cst_82 [1] : vector<8x32xf32> to vector<8xf32>
    %244 = vector.shape_cast %243 : vector<8xf32> to vector<8x1xf32>
    %cst_83 = arith.constant 3.200000e+01 : f32
    %245 = vector.broadcast %cst_83 : f32 to vector<8x1xf32>
    %246 = arith.divf %244, %245 : vector<8x1xf32>
    %247 = vector.broadcast %246 : vector<8x1xf32> to vector<8x32xf32>
    %248 = arith.subf %240, %247 : vector<8x32xf32>
    %249 = arith.mulf %248, %248 : vector<8x32xf32>
    %cst_84 = arith.constant dense<0.000000e+00> : vector<8xf32>
    %250 = vector.multi_reduction <add>, %249, %cst_84 [1] : vector<8x32xf32> to vector<8xf32>
    %251 = vector.shape_cast %250 : vector<8xf32> to vector<8x1xf32>
    %cst_85 = arith.constant 3.200000e+01 : f32
    %252 = vector.broadcast %cst_85 : f32 to vector<8x1xf32>
    %253 = arith.divf %251, %252 : vector<8x1xf32>
    %cst_86 = arith.constant 9.99999974E-6 : f32
    %254 = vector.broadcast %cst_86 : f32 to vector<8x1xf32>
    %255 = arith.addf %253, %254 : vector<8x1xf32>
    %256 = math.rsqrt %255 : vector<8x1xf32>
    %257 = vector.broadcast %256 : vector<8x1xf32> to vector<8x32xf32>
    %258 = arith.mulf %248, %257 : vector<8x32xf32>
    %259 = vector.broadcast %241 : vector<1x32xf32> to vector<8x32xf32>
    %260 = arith.mulf %258, %259 : vector<8x32xf32>
    %261 = vector.broadcast %242 : vector<1x32xf32> to vector<8x32xf32>
    %262 = arith.addf %260, %261 : vector<8x32xf32>
    %c0_87 = arith.constant 0 : index
    %c0_88 = arith.constant 0 : index
    %263 = vector.load %arg13[%c0_87, %c0_88] : memref<32x128xbf16, #tpu.memory_space<vmem>>, vector<32x128xbf16>
    %264 = arith.truncf %262 : vector<8x32xf32> to vector<8x32xbf16>
    %cst_89 = arith.constant dense<0.000000e+00> : vector<8x128xf32>
    %265 = tpu.matmul %264, %263, %cst_89 {dimension_numbers = #tpu.dot_dimension_numbers<[1], [0], [0], [1], [0, 0, 1, 1], [], []>} : vector<8x32xbf16>, vector<32x128xbf16>, vector<8x128xf32> -> vector<8x128xf32>
    %c0_90 = arith.constant 0 : index
    %c0_91 = arith.constant 0 : index
    %266 = vector.load %arg14[%c0_90, %c0_91] : memref<1x128xf32, #tpu.memory_space<vmem>>, vector<1x128xf32>
    %267 = vector.broadcast %266 : vector<1x128xf32> to vector<8x128xf32>
    %268 = arith.addf %265, %267 : vector<8x128xf32>
    %cst_92 = arith.constant 0.000000e+00 : f32
    %269 = vector.broadcast %cst_92 : f32 to vector<8x128xf32>
    %270 = arith.maximumf %268, %269 : vector<8x128xf32>
    %c0_93 = arith.constant 0 : index
    %c0_94 = arith.constant 0 : index
    %271 = vector.load %arg15[%c0_93, %c0_94] : memref<128x32xbf16, #tpu.memory_space<vmem>>, vector<128x32xbf16>
    %272 = arith.truncf %270 : vector<8x128xf32> to vector<8x128xbf16>
    %cst_95 = arith.constant dense<0.000000e+00> : vector<8x32xf32>
    %273 = tpu.matmul %272, %271, %cst_95 {dimension_numbers = #tpu.dot_dimension_numbers<[1], [0], [0], [1], [0, 0, 1, 1], [], []>} : vector<8x128xbf16>, vector<128x32xbf16>, vector<8x32xf32> -> vector<8x32xf32>
    %c0_96 = arith.constant 0 : index
    %c0_97 = arith.constant 0 : index
    %274 = vector.load %arg16[%c0_96, %c0_97] : memref<1x32xf32, #tpu.memory_space<vmem>>, vector<1x32xf32>
    %275 = vector.broadcast %274 : vector<1x32xf32> to vector<8x32xf32>
    %276 = arith.addf %273, %275 : vector<8x32xf32>
    %277 = arith.addf %262, %276 : vector<8x32xf32>
    %c0_98 = arith.constant 0 : index
    %c0_99 = arith.constant 0 : index
    %278 = vector.load %arg21[%c0_98, %c0_99] : memref<1x32xf32, #tpu.memory_space<vmem>>, vector<1x32xf32>
    %c0_100 = arith.constant 0 : index
    %c0_101 = arith.constant 0 : index
    %279 = vector.load %arg22[%c0_100, %c0_101] : memref<1x32xf32, #tpu.memory_space<vmem>>, vector<1x32xf32>
    %cst_102 = arith.constant dense<0.000000e+00> : vector<8xf32>
    %280 = vector.multi_reduction <add>, %277, %cst_102 [1] : vector<8x32xf32> to vector<8xf32>
    %281 = vector.shape_cast %280 : vector<8xf32> to vector<8x1xf32>
    %cst_103 = arith.constant 3.200000e+01 : f32
    %282 = vector.broadcast %cst_103 : f32 to vector<8x1xf32>
    %283 = arith.divf %281, %282 : vector<8x1xf32>
    %284 = vector.broadcast %283 : vector<8x1xf32> to vector<8x32xf32>
    %285 = arith.subf %277, %284 : vector<8x32xf32>
    %286 = arith.mulf %285, %285 : vector<8x32xf32>
    %cst_104 = arith.constant dense<0.000000e+00> : vector<8xf32>
    %287 = vector.multi_reduction <add>, %286, %cst_104 [1] : vector<8x32xf32> to vector<8xf32>
    %288 = vector.shape_cast %287 : vector<8xf32> to vector<8x1xf32>
    %cst_105 = arith.constant 3.200000e+01 : f32
    %289 = vector.broadcast %cst_105 : f32 to vector<8x1xf32>
    %290 = arith.divf %288, %289 : vector<8x1xf32>
    %cst_106 = arith.constant 9.99999974E-6 : f32
    %291 = vector.broadcast %cst_106 : f32 to vector<8x1xf32>
    %292 = arith.addf %290, %291 : vector<8x1xf32>
    %293 = math.rsqrt %292 : vector<8x1xf32>
    %294 = vector.broadcast %293 : vector<8x1xf32> to vector<8x32xf32>
    %295 = arith.mulf %285, %294 : vector<8x32xf32>
    %296 = vector.broadcast %278 : vector<1x32xf32> to vector<8x32xf32>
    %297 = arith.mulf %295, %296 : vector<8x32xf32>
    %298 = vector.broadcast %279 : vector<1x32xf32> to vector<8x32xf32>
    %299 = arith.addf %297, %298 : vector<8x32xf32>
    %c0_107 = arith.constant 0 : index
    %c0_108 = arith.constant 0 : index
    %c0_109 = arith.constant 0 : index
    %300 = vector.load %arg23[%c0_107, %c0_108, %c0_109] : memref<1x8x32xf32, #tpu.memory_space<vmem>>, vector<1x8x32xf32>
    %301 = vector.shape_cast %300 : vector<1x8x32xf32> to vector<8x32xf32>
    %302 = vector.shape_cast %299 : vector<8x32xf32> to vector<1x8x32xf32>
    tpu.vector_store %arg23[%c0_107, %c0_108, %c0_109], %302 {strides = array<i32>} : memref<1x8x32xf32, #tpu.memory_space<vmem>>, vector<1x8x32xf32>,
    return
  }
  func.func @transform_0(%arg0: i32) -> (i32, i32, i32) {
    %c0_i32 = arith.constant 0 : i32
    %c0_i32_0 = arith.constant 0 : i32
    %c0_i32_1 = arith.constant 0 : i32
    return %arg0, %c0_i32, %c0_i32_0 : i32, i32, i32
  }
  func.func @transform_1(%arg0: i32) -> (i32, i32, i32) {
    %c0_i32 = arith.constant 0 : i32
    %c0_i32_0 = arith.constant 0 : i32
    %c0_i32_1 = arith.constant 0 : i32
    return %arg0, %c0_i32, %c0_i32_0 : i32, i32, i32
  }
  func.func @transform_2(%arg0: i32) -> (i32, i32) {
    %c0_i32 = arith.constant 0 : i32
    %c0_i32_0 = arith.constant 0 : i32
    %c0_i32_1 = arith.constant 0 : i32
    return %c0_i32, %c0_i32_0 : i32, i32
  }
  func.func @transform_3(%arg0: i32) -> (i32, i32) {
    %c0_i32 = arith.constant 0 : i32
    %c0_i32_0 = arith.constant 0 : i32
    %c0_i32_1 = arith.constant 0 : i32
    return %c0_i32, %c0_i32_0 : i32, i32
  }
  func.func @transform_4(%arg0: i32) -> (i32, i32) {
    %c0_i32 = arith.constant 0 : i32
    %c0_i32_0 = arith.constant 0 : i32
    %c0_i32_1 = arith.constant 0 : i32
    return %c0_i32, %c0_i32_0 : i32, i32
  }
  func.func @transform_5(%arg0: i32) -> (i32, i32) {
    %c0_i32 = arith.constant 0 : i32
    %c0_i32_0 = arith.constant 0 : i32
    %c0_i32_1 = arith.constant 0 : i32
    return %c0_i32, %c0_i32_0 : i32, i32
  }
  func.func @transform_6(%arg0: i32) -> (i32, i32) {
    %c0_i32 = arith.constant 0 : i32
    %c0_i32_0 = arith.constant 0 : i32
    %c0_i32_1 = arith.constant 0 : i32
    return %c0_i32, %c0_i32_0 : i32, i32
  }
  func.func @transform_7(%arg0: i32) -> (i32, i32) {
    %c0_i32 = arith.constant 0 : i32
    %c0_i32_0 = arith.constant 0 : i32
    %c0_i32_1 = arith.constant 0 : i32
    return %c0_i32, %c0_i32_0 : i32, i32
  }
  func.func @transform_8(%arg0: i32) -> (i32, i32) {
    %c0_i32 = arith.constant 0 : i32
    %c0_i32_0 = arith.constant 0 : i32
    %c0_i32_1 = arith.constant 0 : i32
    return %c0_i32, %c0_i32_0 : i32, i32
  }
  func.func @transform_9(%arg0: i32) -> (i32, i32) {
    %c0_i32 = arith.constant 0 : i32
    %c0_i32_0 = arith.constant 0 : i32
    %c0_i32_1 = arith.constant 0 : i32
    return %c0_i32, %c0_i32_0 : i32, i32
  }
  func.func @transform_10(%arg0: i32) -> (i32, i32) {
    %c0_i32 = arith.constant 0 : i32
    %c0_i32_0 = arith.constant 0 : i32
    %c0_i32_1 = arith.constant 0 : i32
    return %c0_i32, %c0_i32_0 : i32, i32
  }
  func.func @transform_11(%arg0: i32) -> (i32, i32) {
    %c0_i32 = arith.constant 0 : i32
    %c0_i32_0 = arith.constant 0 : i32
    %c0_i32_1 = arith.constant 0 : i32
    return %c0_i32, %c0_i32_0 : i32, i32
  }
  func.func @transform_12(%arg0: i32) -> (i32, i32) {
    %c0_i32 = arith.constant 0 : i32
    %c0_i32_0 = arith.constant 0 : i32
    %c0_i32_1 = arith.constant 0 : i32
    return %c0_i32, %c0_i32_0 : i32, i32
  }
  func.func @transform_13(%arg0: i32) -> (i32, i32) {
    %c0_i32 = arith.constant 0 : i32
    %c0_i32_0 = arith.constant 0 : i32
    %c0_i32_1 = arith.constant 0 : i32
    return %c0_i32, %c0_i32_0 : i32, i32
  }
  func.func @transform_14(%arg0: i32) -> (i32, i32) {
    %c0_i32 = arith.constant 0 : i32
    %c0_i32_0 = arith.constant 0 : i32
    %c0_i32_1 = arith.constant 0 : i32
    return %c0_i32, %c0_i32_0 : i32, i32
  }
  func.func @transform_15(%arg0: i32) -> (i32, i32) {
    %c0_i32 = arith.constant 0 : i32
    %c0_i32_0 = arith.constant 0 : i32
    %c0_i32_1 = arith.constant 0 : i32
    return %c0_i32, %c0_i32_0 : i32, i32
  }
  func.func @transform_16(%arg0: i32) -> (i32, i32) {
    %c0_i32 = arith.constant 0 : i32
    %c0_i32_0 = arith.constant 0 : i32
    %c0_i32_1 = arith.constant 0 : i32
    return %c0_i32, %c0_i32_0 : i32, i32
  }
  func.func @transform_17(%arg0: i32) -> (i32, i32) {
    %c0_i32 = arith.constant 0 : i32
    %c0_i32_0 = arith.constant 0 : i32
    %c0_i32_1 = arith.constant 0 : i32
    return %c0_i32, %c0_i32_0 : i32, i32
  }
  func.func @transform_18(%arg0: i32) -> (i32, i32) {
    %c0_i32 = arith.constant 0 : i32
    %c0_i32_0 = arith.constant 0 : i32
    %c0_i32_1 = arith.constant 0 : i32
    return %c0_i32, %c0_i32_0 : i32, i32
  }
  func.func @transform_19(%arg0: i32) -> (i32, i32) {
    %c0_i32 = arith.constant 0 : i32
    %c0_i32_0 = arith.constant 0 : i32
    %c0_i32_1 = arith.constant 0 : i32
    return %c0_i32, %c0_i32_0 : i32, i32
  }
  func.func @transform_20(%arg0: i32) -> (i32, i32) {
    %c0_i32 = arith.constant 0 : i32
    %c0_i32_0 = arith.constant 0 : i32
    %c0_i32_1 = arith.constant 0 : i32
    return %c0_i32, %c0_i32_0 : i32, i32
  }
  func.func @transform_21(%arg0: i32) -> (i32, i32) {
    %c0_i32 = arith.constant 0 : i32
    %c0_i32_0 = arith.constant 0 : i32
    %c0_i32_1 = arith.constant 0 : i32
    return %c0_i32, %c0_i32_0 : i32, i32
  }
  func.func @transform_22(%arg0: i32) -> (i32, i32, i32) {
    %c0_i32 = arith.constant 0 : i32
    %c0_i32_0 = arith.constant 0 : i32
    %c0_i32_1 = arith.constant 0 : i32
    return %arg0, %c0_i32, %c0_i32_0 : i32, i32, i32
  }
}

</mosaic_0001>

<bundles_post_ra>
// kernel: decoder_layer.1
= control target key start
LH: loop header
LB: loop body
LE: loop exit
PB: predicated region body
PF: predicated region fallthrough
CT: control target
= control target key end

     0   :  { %s3631_s0 = inlined_call_operand.vmem [shape: f32[2,8,32], index: 0, kind: input, shape index: {}]   ;;  %s3632_s1 = inlined_call_operand.vmem [shape: f32[2,12,32], index: 1, kind: input, shape index: {}]   ;;  %s3633_s2 = inlined_call_operand.vmem [shape: bf16[32,96], index: 2, kind: input, shape index: {}]   ;;  %s3634_s3 = inlined_call_operand.vmem [shape: f32[1,96], index: 3, kind: input, shape index: {}]   ;;  %s3635_s4 = inlined_call_operand.vmem [shape: bf16[32,32], index: 4, kind: input, shape index: {}]   ;;  %s3636_s5 = inlined_call_operand.vmem [shape: f32[1,32], index: 5, kind: input, shape index: {}]   ;;  %s3637_s6 = inlined_call_operand.vmem [shape: bf16[32,32], index: 6, kind: input, shape index: {}]   ;;  %s3638_s7 = inlined_call_operand.vmem [shape: f32[1,32], index: 7, kind: input, shape index: {}]   ;;  %s3639_s8 = inlined_call_operand.vmem [shape: bf16[32,64], index: 8, kind: input, shape index: {}]   ;;  %s3640_s9 = inlined_call_operand.vmem [shape: f32[1,64], index: 9, kind: input, shape index: {}]   ;;  %s3641_s10 = inlined_call_operand.vmem [shape: bf16[32,32], index: 10, kind: input, shape index: {}]   ;;  %s3642_s11 = inlined_call_operand.vmem [shape: f32[1,32], index: 11, kind: input, shape index: {}]   ;;  %s3643_s12 = inlined_call_operand.vmem [shape: bf16[32,128], index: 12, kind: input, shape index: {}]   ;;  %s3644_s13 = inlined_call_operand.vmem [shape: f32[1,128], index: 13, kind: input, shape index: {}]   ;;  %s3645_s14 = inlined_call_operand.vmem [shape: bf16[128,32], index: 14, kind: input, shape index: {}]   ;;  %s3646_s15 = inlined_call_operand.vmem [shape: f32[1,32], index: 15, kind: input, shape index: {}]   ;;  %s3647_s16 = inlined_call_operand.vmem [shape: f32[1,32], index: 16, kind: input, shape index: {}]   ;;  %s3648_s17 = inlined_call_operand.vmem [shape: f32[1,32], index: 17, kind: input, shape index: {}]   ;;  %s3649_s18 = inlined_call_operand.vmem [shape: f32[1,32], index: 18, kind: input, shape index: {}]   ;;  %s3650_s19 = inlined_call_operand.vmem [shape: f32[1,32], index: 19, kind: input, shape index: {}]   ;;  %s3651_s20 = inlined_call_operand.vmem [shape: f32[1,32], index: 20, kind: input, shape index: {}]   ;;  %s3652_s21 = inlined_call_operand.vmem [shape: f32[1,32], index: 21, kind: input, shape index: {}]   ;;  %s3653_s22 = inlined_call_operand.hbm [shape: f32[2,8,32], index: 22, kind: output, shape index: {}]  }
   0x1   :  { %3677 = sst [smem:[#allocation9_spill]] %s3631_s0 }
   0x2   :  { %3678 = sst [smem:[#allocation10_spill]] %s3632_s1 }
   0x3   :  { %3679 = sst [smem:[#allocation11_spill]] %s3633_s2 }
   0x4   :  { %3680 = sst [smem:[#allocation12_spill]] %s3634_s3 }
   0x5   :  { %3681 = sst [smem:[#allocation13_spill]] %s3635_s4 }
   0x6   :  { %3682 = sst [smem:[#allocation14_spill]] %s3636_s5 }
   0x7   :  { %3683 = sst [smem:[#allocation15_spill]] %s3637_s6 }
   0x8   :  { %3684 = sst [smem:[#allocation16_spill]] %s3638_s7 }
   0x9   :  { %3685 = sst [smem:[#allocation17_spill]] %s3639_s8 }
   0xa   :  { %27 = vsyncpa [#allocation3], 0 }
   0xb   :  { %29 = vsyncpa [#allocation3 + $0x1], 0  ;;  %s3224_s3 = smov 0   ;;  %s3226_s28 = smov 0  }
   0xc   :  { %s3228_s29 = smov 0   ;;  %s3230_s30 = smov 0  }
   0xd LB: > { %3686 = sst [smem:[#allocation5_spill]] %s3086_s29  ;;  %s3245_s4 = sadd.s32 4294967295, %s3090_s30   ;;  %s3090_s30 = sphi %s3230_s30, %s3712_s30   ;;  %s3086_s29 = sphi %s3228_s29, %s3714_s29   ;;  %s3082_s28 = sphi %s3226_s28, %s3716_s28   ;;  %s3078_s3 = sphi %s3224_s3, %s3715_s3  }
   0xe   : > { %s2600_s0 = sadd.s32 4294967294, %s3090_s30   ;;  %s3249_s23 = sadd.s32 1, %s3090_s30  }
   0xf   : > { %3687 = sst [smem:[#allocation6_spill]] %s3249_s23  ;;  %s514_s1 = sadd.s32 1, %s3086_s29 }
  0x10   : > { %s511_s5 = ssub.s32 %s3090_s30, %s3249_s23  ;;  %p524_p0 = scmp.ne.s32.totalorder %s3086_s29, %s3082_s28 }
  0x11   : > { %p512_p1 = scmp.eq.s32.totalorder %s511_s5, 0  ;;  %p525_p2 = scmp.eq.s32.totalorder %s3245_s4, 1 }
  0x12   : > { %p530_p3 = scmp.ne.s32.totalorder %s3082_s28, %s3078_s3  ;;  %p531_p4 = scmp.eq.s32.totalorder %s2600_s0, 1 }
  0x13   : > { %s3260_s24 = scalar_select %p512_p1, %s3086_s29, %s514_s1  }
  0x14   : > { %p3262_p5 = por %p525_p2, %p524_p0  ;;  %p3266_p6 = por %p531_p4, %p530_p3 }
  0x15   : > { %3688 = sst [smem:[#allocation7_spill]] %s3260_s24  ;;  %p2603_p7 = scmp.ge.s32.totalorder %s3090_s30, 1 }
  0x16   : > { %s3690_s25 = scalar_select %p3266_p6, 1, 0 }
  0x17   : > { %p624_p8 = scmp.lt.s32.totalorder %s3090_s30, 3 }
  0x18   : > { %3691 = sst [smem:[#allocation8_spill]] %s3690_s25 }
  0x19   : > { %p625_p9 = pnand %p2603_p7, %p624_p8 }
  0x1a   : > { %s3692_s27 = sld [smem:[#allocation11_spill]] (!%p625_p9)  ;;  %v3092_v1 = vmov (!%p625_p9), 0.0   ;;  %vm3093_vm0 = vmmov (!%p625_p9), 0   ;;  %p690_p10 = scmp.lt.s32.totalorder (!%p625_p9), %s3245_s4, 1  ;;  %vm727_vm1 = vcmask (!%p625_p9), 261120   ;;  %vm814_vm2 = vcmask (!%p625_p9), 1043456  }
  0x1b   : > { %628 = sbr.rel (%p625_p9) target bundleno = 5122 (0x1402), region = 108  ;;  %2727 = vmatprep.subr.bf16.mxu0 (!%p625_p9), %v3092_v1  ;;  %2753 = vmatprep.subr.bf16.mxu1 (!%p625_p9), %v3092_v1  ;;  %s3693_s29 = sld [smem:[#allocation9_spill]] (!%p625_p9)  ;;  %vm810_vm3 = vcmask (!%p625_p9), 64512   ;;  %vm1366_vm4 = vcmask (!%p625_p9), 130048   ;;  %vm1368_vm5 = vcmask (!%p625_p9), 195584   ;;  %vm1684_vm6 = vcmask (!%p625_p9), 97280  }
  0x1c   : > { %2731 = vmatprep.mubr.msk.bf16.mxu0 (!%p625_p9), %vm3093_vm0, %v3092_v1  ;;  %2755 = vmatprep.mubr.msk.bf16.mxu1 (!%p625_p9), %vm3093_vm0, %v3092_v1  ;;  %s3694_s23 = sld [smem:[#allocation12_spill]] (!%p625_p9)  ;;  %s3663_s24 = smov (!%p625_p9), 80   ;;  %vm1704_vm7 = vcmask (!%p625_p9), 1045504  }
  0x1d   : > { %s3661_s2 = smov (!%p625_p9), 72   ;;  %s3670_s1 = smov (!%p625_p9), 112  }
  0x1e   : > { %s3697_s8 = sld [smem:[#allocation17_spill]] (!%p625_p9)  ;;  %s3703_s7 = sld [smem:[#allocation16_spill]] (!%p625_p9) }
  0x1f   : > { %s3707_s25 = smov (!%p625_p9), 72  }
  0x20   : > { %v2970_v0 = vld [vmem:[%s3692_s27] sm:$0xff] (!%p625_p9)   ;;  %v2971_v2 = vld [vmem:[%s3692_s27 + $0x8] sm:$0xff] (!%p625_p9)   ;;  %s3665_s27 = smov (!%p625_p9), 104  }
  0x21   : > { %2728 = vmatpush3.bf16.msra.mxu0 (!%p625_p9), %v2970_v0 }
  0x22   : > { %2729 = vmatprep.subr.bf16.mxu0 %v3092_v1  ;;  %s3287_s5 = scalar_select %p690_p10, %s3245_s4, 1  ;;  %v2608_v5 = vld [vmem:[%s3694_s23] ss:$0 sm:$0xff] }
  0x23   : > { %s3664_s23 = smov 88  }
  0x24   : > { %s2605_s26 = sshll.u32 %s3287_s5, 3 }
  0x25   : > { %2730 = vmatpush3.bf16.msra.mxu0 %v2971_v2  ;;  %s693_s0 = scalar_lea.vmem %s3693_s29, %s2605_s26  ;;  %s3662_s29 = smov 96  }
  0x26   : > { %2735 = vmatprep.subr.bf16.mxu0 %v3092_v1  ;;  %v3294_v3 = vld [vmem:[%s693_s0] sm:$0xff]  ;;  %s3672_s26 = smov 120   ;;  %s3100_s0 = smov 64  }
  0x27   : > { %v707_v4 = vpack.c.bf16 %v3294_v3, %v3294_v3 }
  0x29   : > { %2732 = vmatmul.mubr.msk.bf16.vlgmr.msra.gmra.mrb[0].mxu0 %vm727_vm1, %v707_v4 }
  0x2a   : > { %2737 = vmatprep.mubr.msk.bf16.mxu0 %vm3093_vm0, %v3092_v1 }
  0xfc   : > { %v765_v6 = vpop.f32.mrb[0].mxu0 }
  0xfd   : > { %v766_v7 = vadd.f32 %v2608_v5, %v765_v6  ;;  %v2733_v8 = vpop.f32.mrb[1].mxu0 }
  0xfe   : > { %v768_v9 = vpop.f32.mrb[2].mxu0 }
  0xff   : > { %773 = vrot.lane.b32.xlu0 %v766_v7, %s3662_s29  ;;  %v2734_v10 = vpop.f32.mrb[3].mxu0  ;;  %v771_v12 = vmul.f32 0.35355338, %v766_v7  ;;  %v3316_v23 = vpack.c.bf16 %v766_v7, %v766_v7  ;;  %s3104_s29 = smov 40  }
 0x101   : > { %v808_v13 = vpack.c.bf16 %v771_v12, %v771_v12 }
 0x171   : > { %v774_v11 = vpop.permute.xlu0 %773 }
 0x172   : > { %776 = vxpose.xlu0.b32.start.end [1/1] (short) (narrow) %v774_v11, 8 }
 0x19b   : > { %1065 = vrot.lane.b32.xlu0 %v766_v7, %s3663_s24  ;;  %s3669_s24 = smov 8  }
 0x19f   : > { %957 = vrot.lane.b32.xlu0 %v808_v13, %s3672_s26  ;;  %s3701_s26 = smov 112  }
 0x1a3   : > { %1245 = vrot.lane.b32.xlu0 %v808_v13, %s3665_s27  ;;  %s2667_s27 = sshll.u32 %s3287_s5, 4  ;;  %s3700_s5 = smov 120  }
 0x1f2   : > { %v792_v14 = vpop.trf.xlu0 }
 0x1f3   : > { %v809_v15 = vpack.c.bf16 %v792_v14, %v792_v14 }
 0x1f5   : > { %v816_v16 = vsel %vm814_vm2, %v809_v15, 0 }
 0x1f6   : > { %2736 = vmatpush3.bf16.msra.mxu0 %v816_v16 }
 0x1f7   : > { %2741 = vmatprep.subr.bf16.mxu0 %v3092_v1 }
 0x1f9   : > { %2738 = vmatmul.mubr.msk.bf16.vlgmr.msra.gmra.mrb[4].mxu0 %vm810_vm3, %v808_v13 }
 0x1fa   : > { %2743 = vmatprep.mubr.msk.bf16.mxu0 %vm3093_vm0, %v3092_v1 }
 0x20d   : > { %v1066_v17 = vpop.permute.xlu0 %1065 }
 0x20e   : > { %1068 = vxpose.xlu0.b32.start.end [1/1] (short) (narrow) %v1066_v17, 8 }
 0x211   : > { %v958_v37 = vpop.permute.xlu0 %957 }
 0x215   : > { %v1246_v38 = vpop.permute.xlu0 %1245 }
 0x28e   : > { %v1084_v40 = vpop.trf.xlu0 }
 0x28f   : > { %v1100_v43 = vpack.c.bf16 %v1084_v40, %v1084_v40 }
 0x291   : > { %v1107_v45 = vsel %vm814_vm2, %v1100_v43, 0 }
 0x2cc   : > { %v852_v18 = vpop.f32.mrb[4].mxu0 }
 0x2cd   : > { %v2739_v19 = vpop.f32.mrb[5].mxu0  ;;  %v858_v20 = vsel %vm810_vm3, %v852_v18, -inf }
 0x2ce   : > { %859 = vmax.xlane.f32.xlu1 %v858_v20  ;;  %v855_v21 = vpop.f32.mrb[6].mxu0 }
 0x2cf   : > { %v2740_v22 = vpop.f32.mrb[7].mxu0 }
 0x2df   : > { %920 = vrot.lane.b32.xlu1 %v766_v7, %s3664_s23  ;;  %s3668_s23 = smov 16  }
 0x2e3   : > { %1209 = vrot.lane.b32.xlu1 %v766_v7, %s3661_s2  ;;  %s3103_s2 = smov 56  }
 0x2e7   : > { %872 = vrot.lane.b32.xlu1 %v3316_v23, %s3100_s0  ;;  %s3102_s0 = smov 48  }
 0x35b   : > { %v860_v24 = vpop.xlane.xlu1 %859 }
 0x35c   : > { %v861_v25 = vsub.f32 %v852_v18, %v860_v24 }
 0x35e   : > { %v862_v26 = vmul.f32 1.442695, %v861_v25 }
 0x35f   : > { %v921_v27 = vpop.permute.xlu1 %920 }
 0x360   : > { %2990 = vpow2.f32 %v862_v26 }
 0x363   : > { %v1210_v28 = vpop.permute.xlu1 %1209 }
 0x364   : > { %1212 = vxpose.xlu0.b32.start.end [1/1] (short) (narrow) %v1210_v28, 8 }
 0x367   : > { %v873_v29 = vpop.permute.xlu1 %872 }
 0x368   : > { %v878_v30 = vsel %vm814_vm2, %v873_v29, 0 }
 0x369   : > { %2742 = vmatpush3.bf16.msra.mxu0 %v878_v30 }
 0x36a   : > { %v2991_v31 = vpop.eup %2990  ;;  %2747 = vmatprep.subr.bf16.mxu0 %v3092_v1 }
 0x36b   : > { %v864_v32 = vsel %vm810_vm3, %v2991_v31, 0.0 }
 0x36c   : > { %865 = vadd.xlane.f32.xlu1 %v864_v32 }
 0x37d   : > { %1101 = vrot.lane.b32.xlu1 %v808_v13, %s3670_s1  ;;  %s3699_s1 = sld [smem:[#allocation15_spill]] }
 0x3a6   : > { %923 = vxpose.xlu1.b32.start.end [1/1] (short) (narrow) %v921_v27, 8 }
 0x3e4   : > { %v1228_v46 = vpop.trf.xlu0 }
 0x3e5   : > { %v1244_v47 = vpack.c.bf16 %v1228_v46, %v1228_v46 }
 0x3e7   : > { %v1251_v48 = vsel %vm814_vm2, %v1244_v47, 0 }
 0x3f9   : > { %v866_v33 = vpop.xlane.xlu1 %865 }
 0x3fa   : > { %2992 = vrcp.f32 %v866_v33 }
 0x3fd   : > { %v1102_v39 = vpop.permute.xlu1 %1101 }
 0x404   : > { %v2993_v34 = vpop.eup %2992 }
 0x405   : > { %v868_v35 = vmul.f32 %v2993_v34, %v2991_v31 }
 0x407   : > { %v869_v36 = vpack.c.bf16 %v868_v35, %v868_v35 }
 0x409   : > { %2744 = vmatmul.mubr.msk.bf16.vlgmr.msra.gmra.mrb[8].mxu0 %vm810_vm3, %v869_v36 }
 0x40a   : > { %2749 = vmatprep.mubr.msk.bf16.mxu0 %vm3093_vm0, %v3092_v1 }
 0x426   : > { %v939_v41 = vpop.trf.xlu1 }
 0x427   : > { %v955_v42 = vpack.c.bf16 %v939_v41, %v939_v41 }
 0x429   : > { %v963_v44 = vsel %vm814_vm2, %v955_v42, 0 }
 0x42a   : > { %2748 = vmatpush3.bf16.msra.mxu0 %v963_v44 }
 0x42b   : > { %2759 = vmatprep.subr.bf16.mxu0 %v3092_v1 }
 0x42d   : > { %2750 = vmatmul.mubr.msk.bf16.vlgmr.msra.gmra.mrb[12].mxu0 %vm810_vm3, %v958_v37 }
 0x42e   : > { %2760 = vmatpush3.bf16.msra.mxu0 %v1107_v45  ;;  %2761 = vmatprep.mubr.msk.bf16.mxu0 %vm3093_vm0, %v3092_v1 }
 0x42f   : > { %2771 = vmatprep.subr.bf16.mxu0 %v3092_v1 }
 0x435   : > { %2762 = vmatmul.mubr.msk.bf16.vlgmr.msra.gmra.mrb[16].mxu0 %vm810_vm3, %v1102_v39 }
 0x436   : > { %2772 = vmatpush3.bf16.msra.mxu0 %v1251_v48  ;;  %2773 = vmatprep.mubr.msk.bf16.mxu0 %vm3093_vm0, %v3092_v1 }
 0x437   : > { %2783 = vmatprep.subr.bf16.mxu0 %v3092_v1 }
 0x43d   : > { %2774 = vmatmul.mubr.msk.bf16.vlgmr.msra.gmra.mrb[20].mxu0 %vm810_vm3, %v1246_v38 }
 0x43e   : > { %2787 = vmatprep.mubr.msk.bf16.mxu0 %vm3093_vm0, %v3092_v1 }
 0x4dc   : > { %v3341_v49 = vpop.f32.mrb[8].mxu0 }
 0x4dd   : > { %v2745_v50 = vpop.f32.mrb[9].mxu0 }
 0x4de   : > { %v917_v51 = vpop.f32.mrb[10].mxu0 }
 0x4df   : > { %v2746_v52 = vpop.f32.mrb[11].mxu0 }
 0x500   : > { %v999_v53 = vpop.f32.mrb[12].mxu0 }
 0x501   : > { %v2751_v54 = vpop.f32.mrb[13].mxu0  ;;  %v1005_v55 = vsel %vm810_vm3, %v999_v53, -inf }
 0x502   : > { %1006 = vmax.xlane.f32.xlu0 %v1005_v55  ;;  %v1002_v56 = vpop.f32.mrb[14].mxu0 }
 0x503   : > { %v2752_v57 = vpop.f32.mrb[15].mxu0 }
 0x508   : > { %v1143_v58 = vpop.f32.mrb[16].mxu0 }
 0x509   : > { %v2763_v59 = vpop.f32.mrb[17].mxu0  ;;  %v1149_v60 = vsel %vm810_vm3, %v1143_v58, -inf }
 0x50a   : > { %1150 = vmax.xlane.f32.xlu1 %v1149_v60  ;;  %v1146_v61 = vpop.f32.mrb[18].mxu0 }
 0x50b   : > { %v2764_v62 = vpop.f32.mrb[19].mxu0  ;;  %v2975_v61 = vld [vmem:[%s3697_s8 + $0x8] sm:$0xff]  }
 0x510   : > { %v1287_v63 = vpop.f32.mrb[20].mxu0 }
 0x511   : > { %v2775_v0 = vpop.f32.mrb[21].mxu0  ;;  %v1293_v2 = vsel %vm810_vm3, %v1287_v63, -inf }
 0x512   : > { %1294 = vmax.xlane.f32.xlu0 %v1293_v2  ;;  %v1290_v4 = vpop.f32.mrb[22].mxu0 }
 0x513   : > { %v2776_v5 = vpop.f32.mrb[23].mxu0 }
 0x58f   : > { %v1007_v6 = vpop.xlane.xlu0 %1006 }
 0x590   : > { %v1008_v7 = vsub.f32 %v999_v53, %v1007_v6 }
 0x592   : > { %v1009_v8 = vmul.f32 1.442695, %v1008_v7 }
 0x594   : > { %2994 = vpow2.f32 %v1009_v8 }
 0x597   : > { %v1151_v9 = vpop.xlane.xlu1 %1150 }
 0x598   : > { %v1152_v10 = vsub.f32 %v1143_v58, %v1151_v9 }
 0x59a   : > { %v1153_v11 = vmul.f32 1.442695, %v1152_v10 }
 0x59c   : > { %2996 = vpow2.f32 %v1153_v11 }
 0x59e   : > { %v2995_v12 = vpop.eup %2994 }
 0x59f   : > { %v1011_v13 = vsel %vm810_vm3, %v2995_v12, 0.0  ;;  %v1295_v16 = vpop.xlane.xlu0 %1294 }
 0x5a0   : > { %1012 = vadd.xlane.f32.xlu1 %v1011_v13  ;;  %v1296_v17 = vsub.f32 %v1287_v63, %v1295_v16  ;;  %v2976_v16 = vld [vmem:[%s3699_s1] sm:$0xff]  }
 0x5a2   : > { %v1297_v18 = vmul.f32 1.442695, %v1296_v17  ;;  %v2630_v17 = vld [vmem:[%s3640_s9] ss:$0 sm:$0xff] }
 0x5a4   : > { %2998 = vpow2.f32 %v1297_v18 }
 0x5a6   : > { %v2997_v14 = vpop.eup %2996 }
 0x5a7   : > { %v1155_v15 = vsel %vm810_vm3, %v2997_v14, 0.0 }
 0x5a8   : > { %1156 = vadd.xlane.f32.xlu0 %v1155_v15 }
 0x5ae   : > { %v2999_v19 = vpop.eup %2998 }
 0x5af   : > { %v1299_v20 = vsel %vm810_vm3, %v2999_v19, 0.0 }
 0x5b1   : > { %1161 = vrot.lane.b32.xlu1 %v3316_v23, %s3102_s0  ;;  %s3695_s0 = sld [smem:[#allocation13_spill]] }
 0x5b7   : > { %v2972_v39 = vld [vmem:[%s3695_s0] sm:$0xff]   ;;  %v2973_v48 = vld [vmem:[%s3695_s0 + $0x8] sm:$0xff]   ;;  %s687_s0 = sand.u32 1, %s3082_s28  }
 0x5b8   : > { %2784 = vmatpush3.bf16.msra.mxu0 %v2972_v39 }
 0x5b9   : > { %2785 = vmatprep.subr.bf16.mxu0 %v3092_v1 }
 0x5bc   : > { %2786 = vmatpush3.bf16.msra.mxu0 %v2973_v48 }
 0x5bd   : > { %2799 = vmatprep.subr.bf16.mxu0 %v3092_v1 }
 0x5be   : > { %1017 = vrot.lane.b32.xlu0 %v3316_v23, %s3103_s2  ;;  %s3667_s2 = smov 24  }
 0x5d5   : > { %1300 = vadd.xlane.f32.xlu1 %v1299_v20 }
 0x5e6   : > { %1305 = vrot.lane.b32.xlu1 %v3316_v23, %s3104_s29 }
 0x62d   : > { %v1013_v21 = vpop.xlane.xlu1 %1012 }
 0x62e   : > { %3000 = vrcp.f32 %v1013_v21 }
 0x631   : > { %v1162_v28 = vpop.permute.xlu1 %1161 }
 0x632   : > { %v1167_v30 = vsel %vm814_vm2, %v1162_v28, 0 }
 0x635   : > { %v1157_v22 = vpop.xlane.xlu0 %1156 }
 0x636   : > { %3002 = vrcp.f32 %v1157_v22 }
 0x638   : > { %v3001_v24 = vpop.eup %3000 }
 0x639   : > { %v1018_v25 = vpop.permute.xlu0 %1017  ;;  %v1015_v26 = vmul.f32 %v3001_v24, %v2995_v12 }
 0x63a   : > { %v1023_v27 = vsel %vm814_vm2, %v1018_v25, 0 }
 0x63b   : > { %2754 = vmatpush3.bf16.msra.mxu1 %v1023_v27  ;;  %v1016_v29 = vpack.c.bf16 %v1015_v26, %v1015_v26 }
 0x63c   : > { %2765 = vmatprep.subr.bf16.mxu1 %v3092_v1 }
 0x63e   : > { %2756 = vmatmul.mubr.msk.bf16.vlgmr.msra.gmra.mrb[0].mxu1 %vm810_vm3, %v1016_v29 }
 0x63f   : > { %2766 = vmatpush3.bf16.msra.mxu1 %v1167_v30  ;;  %2767 = vmatprep.mubr.msk.bf16.mxu1 %vm3093_vm0, %v3092_v1  ;;  %v2624_v30 = vld [vmem:[%s3647_s16] ss:$0 sm:$0xff] }
 0x640   : > { %v3003_v23 = vpop.eup %3002  ;;  %2777 = vmatprep.subr.bf16.mxu1 %v3092_v1 }
 0x641   : > { %v1159_v31 = vmul.f32 %v3003_v23, %v2997_v14 }
 0x643   : > { %v1160_v32 = vpack.c.bf16 %v1159_v31, %v1159_v31  ;;  %v2625_v31 = vld [vmem:[%s3648_s17] ss:$0 sm:$0xff] }
 0x646   : > { %2768 = vmatmul.mubr.msk.bf16.vlgmr.msra.gmra.mrb[4].mxu1 %vm810_vm3, %v1160_v32 }
 0x647   : > { %2779 = vmatprep.mubr.msk.bf16.mxu1 %vm3093_vm0, %v3092_v1 }
 0x662   : > { %v1301_v33 = vpop.xlane.xlu1 %1300 }
 0x663   : > { %3004 = vrcp.f32 %v1301_v33 }
 0x666   : > { %v1306_v34 = vpop.permute.xlu1 %1305 }
 0x667   : > { %v1311_v35 = vsel %vm814_vm2, %v1306_v34, 0 }
 0x668   : > { %2778 = vmatpush3.bf16.msra.mxu1 %v1311_v35 }
 0x669   : > { %2791 = vmatprep.subr.bf16.mxu1 %v3092_v1 }
 0x66d   : > { %v3005_v36 = vpop.eup %3004 }
 0x66e   : > { %v1303_v37 = vmul.f32 %v3005_v36, %v2999_v19 }
 0x670   : > { %v1304_v38 = vpack.c.bf16 %v1303_v37, %v1303_v37 }
 0x672   : > { %2780 = vmatmul.mubr.msk.bf16.vlgmr.msra.gmra.mrb[8].mxu1 %vm810_vm3, %v1304_v38  ;;  %v2626_v38 = vld [vmem:[%s3703_s7] ss:$0 sm:$0xff] }
 0x673   : > { %2795 = vmatprep.mubr.msk.bf16.mxu1 %vm3093_vm0, %v3092_v1  ;;  %2792 = vmatpush3.bf16.msra.mxu1 %v2976_v16 }
 0x674   : > { %2793 = vmatprep.subr.bf16.mxu1 %v3092_v1 }
 0x711   : > { %v1059_v40 = vpop.f32.mrb[0].mxu1 }
 0x712   : > { %1354 = vrot.lane.b32.xlu1 %v1059_v40, %s3669_s24  ;;  %v2757_v41 = vpop.f32.mrb[1].mxu1 }
 0x713   : > { %v1062_v42 = vpop.f32.mrb[2].mxu1 }
 0x714   : > { %v2758_v43 = vpop.f32.mrb[3].mxu1 }
 0x719   : > { %v1203_v44 = vpop.f32.mrb[4].mxu1 }
 0x71a   : > { %1358 = vrot.lane.b32.xlu0 %v1203_v44, %s3668_s23  ;;  %v2769_v45 = vpop.f32.mrb[5].mxu1  ;;  %s3696_s23 = sld [smem:[#allocation10_spill]] }
 0x71b   : > { %v1206_v46 = vpop.f32.mrb[6].mxu1 }
 0x71c   : > { %v2770_v47 = vpop.f32.mrb[7].mxu1 }
 0x720   : > { %s698_s24 = scalar_lea.vmem %s3696_s23, %s2667_s27  ;;  %s3698_s23 = sld [smem:[#allocation14_spill]] }
 0x721   : > { %v701_v62 = vld [vmem:[%s698_s24] sm:$0xff]  ;;  %v702_v63 = vld [vmem:[%s698_s24 + $0x8] sm:$0xf]  ;;  %s3709_s27 = smov 16  }
 0x722   : > { %v1539_v0 = vpack.c.bf16 %v702_v63, %v701_v62 }
 0x726   : > { %v2620_v2 = vld [vmem:[%s3698_s23] ss:$0 sm:$0xff]  ;;  %s3702_s23 = smov 104  }
 0x745   : > { %v1347_v50 = vpop.f32.mrb[8].mxu1 }
 0x746   : > { %1362 = vrot.lane.b32.xlu1 %v1347_v50, %s3667_s2  ;;  %v2781_v51 = vpop.f32.mrb[9].mxu1  ;;  %s3708_s2 = smov 8  }
 0x747   : > { %v1350_v52 = vpop.f32.mrb[10].mxu1 }
 0x748   : > { %v2782_v53 = vpop.f32.mrb[11].mxu1 }
 0x784   : > { %v1355_v54 = vpop.permute.xlu1 %1354 }
 0x785   : > { %v1365_v56 = vsel %vm810_vm3, %v3341_v49, %v1355_v54  ;;  %v2974_v49 = vld [vmem:[%s3697_s8] sm:$0xff]  }
 0x78c   : > { %v1359_v55 = vpop.permute.xlu0 %1358 }
 0x78d   : > { %v1367_v57 = vsel %vm1366_vm4, %v1365_v56, %v1359_v55 }
 0x7b8   : > { %v1363_v58 = vpop.permute.xlu1 %1362 }
 0x7b9   : > { %v1369_v59 = vsel %vm1368_vm5, %v1367_v57, %v1363_v58 }
 0x7ba   : > { %v1374_v60 = vpack.c.bf16 %v1369_v59, %v1369_v59 }
 0x7bc   : > { %2788 = vmatmul.mubr.msk.bf16.vlgmr.msra.gmra.mrb[24].mxu0 %vm727_vm1, %v1374_v60 }
 0x7bd   : > { %2803 = vmatprep.mubr.msk.bf16.mxu0 %vm3093_vm0, %v3092_v1  ;;  %2800 = vmatpush3.bf16.msra.mxu0 %v2974_v49 }
 0x7be   : > { %2801 = vmatprep.subr.bf16.mxu0 %v3092_v1 }
 0x7c1   : > { %2802 = vmatpush3.bf16.msra.mxu0 %v2975_v61 }
 0x7c2   : > { %2813 = vmatprep.subr.bf16.mxu0 %v3092_v1 }
 0x7c4   : > { %2804 = vmatmul.mubr.msk.bf16.vlgmr.msra.gmra.mrb[28].mxu0 %vm727_vm1, %v1539_v0 }
 0x7c5   : > { %2815 = vmatprep.mubr.msk.bf16.mxu0 %vm3093_vm0, %v3092_v1 }
 0x88f   : > { %v1431_v4 = vpop.f32.mrb[24].mxu0 }
 0x890   : > { %v1432_v5 = vadd.f32 %v2620_v2, %v1431_v4  ;;  %v2789_v6 = vpop.f32.mrb[25].mxu0 }
 0x891   : > { %v1434_v7 = vpop.f32.mrb[26].mxu0 }
 0x892   : > { %v2790_v8 = vpop.f32.mrb[27].mxu0  ;;  %v1437_v9 = vadd.f32 %v1432_v5, %v3294_v3  ;;  %v2977_v3 = vld [vmem:[%s3699_s1 + $0x8] sm:$0xff]  }
 0x893   : > { %2794 = vmatpush3.bf16.msra.mxu1 %v2977_v3 }
 0x894   : > { %v1440_v10 = vsel %vm727_vm1, %v1437_v9, 0.0  ;;  %2807 = vmatprep.subr.bf16.mxu1 %v3092_v1 }
 0x895   : > { %1441 = vadd.xlane.f32.xlu0 %v1440_v10 }
 0x897   : > { %v1596_v18 = vpop.f32.mrb[28].mxu0 }
 0x898   : > { %v3417_v19 = vadd.f32 %v2630_v17, %v1596_v18  ;;  %v2805_v20 = vpop.f32.mrb[29].mxu0 }
 0x899   : > { %v1599_v21 = vpop.f32.mrb[30].mxu0 }
 0x89a   : > { %v3419_v22 = vadd.f32 %v2630_v17, %v1599_v21  ;;  %v2806_v24 = vpop.f32.mrb[31].mxu0 }
 0x89c   : > { %v2946_v25 = vpack.i.bf16 %v3419_v22, %v3417_v19 }
 0x8ab   : > { %2947 = vrot.lane.b32.xlu0 %v2946_v25, %s3700_s5 }
 0x8af   : > { %2957 = vrot.lane.b32.xlu0 %v2946_v25, %s3702_s23 }
 0x922   : > { %v1442_v11 = vpop.xlane.xlu0 %1441 }
 0x923   : > { %v1444_v12 = vmul.f32 0.03125, %v1442_v11 }
 0x925   : > { %v1445_v13 = vsub.f32 %v1437_v9, %v1444_v12 }
 0x926   : > { %v2948_v46 = vpop.permute.xlu0 %2947 }
 0x927   : > { %v1446_v14 = vmul.f32 %v1445_v13, %v1445_v13  ;;  %v2949_v50 = vunpack.i.l.bf16 %v2948_v46  ;;  %v2950_v52 = vunpack.i.h.bf16 %v2948_v46 }
 0x929   : > { %v1447_v15 = vsel %vm727_vm1, %v1446_v14, 0.0  ;;  %v2961_v53 = vpack.i.bf16 %v2949_v50, %v3417_v19  ;;  %v2963_v54 = vpack.i.bf16 %v2950_v52, %v3419_v22 }
 0x92a   : > { %1448 = vadd.xlane.f32.xlu1 %v1447_v15  ;;  %v2958_v47 = vpop.permute.xlu0 %2957 }
 0x92b   : > { %v2959_v48 = vunpack.i.l.bf16 %v2958_v47  ;;  %v2960_v51 = vunpack.i.h.bf16 %v2958_v47 }
 0x93b   : > { %2952 = vrot.lane.b32.xlu1 %v2946_v25, %s3701_s26 }
 0x9b7   : > { %v1449_v26 = vpop.xlane.xlu1 %1448 }
 0x9b8   : > { %v1450_v27 = vmul.f32 0.03125, %v1449_v26 }
 0x9ba   : > { %v1451_v28 = vadd.f32 1e-05, %v1450_v27 }
 0x9bb   : > { %v2953_v32 = vpop.permute.xlu1 %2952 }
 0x9bc   : > { %3006 = vrsqrt.f32 %v1451_v28  ;;  %v2954_v34 = vunpack.i.l.bf16 %v2953_v32  ;;  %v2955_v36 = vunpack.i.h.bf16 %v2953_v32 }
 0x9be   : > { %1904 = vxpose.xlu0.b32.start [1/2] (short) (narrow) %v2954_v34, 8 }
 0x9c2   : > { %1905 = vxpose.xlu0.b32.end [2/2] (short) (narrow) %v2955_v36, 8 }
 0x9c6   : > { %v3007_v29 = vpop.eup %3006 }
 0x9c7   : > { %v1453_v23 = vmul.f32 %v3007_v29, %v1445_v13 }
 0x9c9   : > { %v1460_v33 = vmul.f32 %v2624_v30, %v1453_v23 }
 0x9cb   : > { %v3432_v35 = vadd.f32 %v2625_v31, %v1460_v33 }
 0x9cd   : > { %v1472_v37 = vpack.c.bf16 %v3432_v35, %v3432_v35 }
 0x9cf   : > { %2796 = vmatmul.mubr.msk.bf16.vlgmr.msra.gmra.mrb[12].mxu1 %vm727_vm1, %v1472_v37 }
 0x9d0   : > { %2809 = vmatprep.mubr.msk.bf16.mxu1 %vm3093_vm0, %v3092_v1 }
 0xa3e   : > { %v1920_v56 = vpop.trf.xlu0 }
 0xa3f   : > { %v1936_v0 = vpack.c.bf16 %v1920_v56, %v1920_v56 }
 0xa41   : > { %v1943_v4 = vsel %vm814_vm2, %v1936_v0, 0 }
 0xaa2   : > { %v1529_v39 = vpop.f32.mrb[12].mxu1 }
 0xaa3   : > { %v1530_v40 = vadd.f32 %v2626_v38, %v1529_v39  ;;  %v2797_v41 = vpop.f32.mrb[13].mxu1 }
 0xaa4   : > { %v1532_v42 = vpop.f32.mrb[14].mxu1 }
 0xaa5   : > { %v1603_v43 = vmul.f32 0.35355338, %v1530_v40  ;;  %v2798_v44 = vpop.f32.mrb[15].mxu1 }
 0xaa7   : > { %v1636_v45 = vpack.c.bf16 %v1603_v43, %v1603_v43 }
 0xaa9   : > { %1790 = vrot.lane.b32.xlu1 %v1636_v45, %s3700_s5  ;;  %1937 = vrot.lane.b32.xlu0 %v1636_v45, %s3701_s26  ;;  %s3704_s5 = smov 88   ;;  %s3705_s26 = smov 80  }
 0xaad   : > { %2084 = vrot.lane.b32.xlu0 %v1636_v45, %s3702_s23  ;;  %s3706_s23 = smov 96  }
 0xacb   : > { %2051 = vxpose.xlu0.b32.start [1/2] (short) (narrow) %v2959_v48, 8 }
 0xacf   : > { %2052 = vxpose.xlu0.b32.end [2/2] (short) (narrow) %v2960_v51, 8 }
 0xad2   : > { %2962 = vxpose.xlu1.b32.start [1/2] (short) (narrow) %v2961_v53, 8 }
 0xad6   : > { %2964 = vxpose.xlu1.b32.end [2/2] (short) (narrow) %v2963_v54, 8 }
 0xb1b   : > { %v1791_v55 = vpop.permute.xlu1 %1790  ;;  %v1938_v62 = vpop.permute.xlu0 %1937 }
 0xb1f   : > { %v2085_v2 = vpop.permute.xlu0 %2084 }
 0xb4b   : > { %v2067_v5 = vpop.trf.xlu0 }
 0xb4c   : > { %v2083_v6 = vpack.c.bf16 %v2067_v5, %v2067_v5 }
 0xb4e   : > { %v2090_v7 = vsel %vm814_vm2, %v2083_v6, 0 }
 0xb52   : > { %v2965_v57 = vpop.trf.xlu1 }
 0xb53   : > { %v2969_v58 = vunpack.i.h.bf16 %v2965_v57  ;;  %v2966_v59 = vunpack.i.l.bf16 %v2965_v57 }
 0xb55   : > { %v1637_v60 = vpack.c.bf16 %v2966_v59, %v2966_v59  ;;  %v1788_v61 = vpack.c.bf16 %v2969_v58, %v2969_v58 }
 0xb57   : > { %v1642_v49 = vsel %vm814_vm2, %v1637_v60, 0  ;;  %v1796_v63 = vsel %vm814_vm2, %v1788_v61, 0 }
 0xb58   : > { %2808 = vmatpush3.bf16.msra.mxu1 %v1642_v49 }
 0xb59   : > { %2819 = vmatprep.subr.bf16.mxu1 %v3092_v1 }
 0xb5b   : > { %2810 = vmatmul.mubr.msk.bf16.vlgmr.msra.gmra.mrb[16].mxu1 %vm810_vm3, %v1636_v45  ;;  %v1697_v45 = vpack.c.bf16 %v3419_v22, %v3417_v19 }
 0xb5c   : > { %2820 = vmatpush3.bf16.msra.mxu1 %v1796_v63  ;;  %2821 = vmatprep.mubr.msk.bf16.mxu1 %vm3093_vm0, %v3092_v1 }
 0xb5d   : > { %2831 = vmatprep.subr.bf16.mxu1 %v3092_v1 }
 0xb63   : > { %2822 = vmatmul.mubr.msk.bf16.vlgmr.msra.gmra.mrb[20].mxu1 %vm810_vm3, %v1791_v55 }
 0xb64   : > { %2832 = vmatpush3.bf16.msra.mxu1 %v1943_v4  ;;  %2833 = vmatprep.mubr.msk.bf16.mxu1 %vm3093_vm0, %v3092_v1 }
 0xb65   : > { %2843 = vmatprep.subr.bf16.mxu1 %v3092_v1 }
 0xb6b   : > { %2834 = vmatmul.mubr.msk.bf16.vlgmr.msra.gmra.mrb[24].mxu1 %vm810_vm3, %v1938_v62 }
 0xb6c   : > { %2844 = vmatpush3.bf16.msra.mxu1 %v2090_v7  ;;  %2845 = vmatprep.mubr.msk.bf16.mxu1 %vm3093_vm0, %v3092_v1 }
 0xb6d   : > { %2855 = vmatprep.subr.bf16.mxu1 %v3092_v1 }
 0xb73   : > { %2846 = vmatmul.mubr.msk.bf16.vlgmr.msra.gmra.mrb[28].mxu1 %vm810_vm3, %v2085_v2 }
 0xb74   : > { %2859 = vmatprep.mubr.msk.bf16.mxu1 %vm3093_vm0, %v3092_v1 }
 0xc2e   : > { %v1678_v8 = vpop.f32.mrb[16].mxu1 }
 0xc2f   : > { %v2811_v9 = vpop.f32.mrb[17].mxu1  ;;  %v1685_v10 = vsel %vm1684_vm6, %v1678_v8, -inf }
 0xc30   : > { %1686 = vmax.xlane.f32.xlu1 %v1685_v10  ;;  %v1681_v11 = vpop.f32.mrb[18].mxu1 }
 0xc31   : > { %v2812_v12 = vpop.f32.mrb[19].mxu1 }
 0xc36   : > { %v1832_v13 = vpop.f32.mrb[20].mxu1 }
 0xc37   : > { %v2823_v14 = vpop.f32.mrb[21].mxu1  ;;  %v1838_v15 = vsel %vm1684_vm6, %v1832_v13, -inf }
 0xc38   : > { %1839 = vmax.xlane.f32.xlu0 %v1838_v15  ;;  %v1835_v16 = vpop.f32.mrb[22].mxu1  ;;  %v2978_v15 = vld [vmem:[%s3641_s10] sm:$0xff]  }
 0xc39   : > { %v2824_v3 = vpop.f32.mrb[23].mxu1  ;;  %2856 = vmatpush3.bf16.msra.mxu1 %v2978_v15 }
 0xc3a   : > { %2857 = vmatprep.subr.bf16.mxu1 %v3092_v1 }
 0xc3e   : > { %v1979_v17 = vpop.f32.mrb[24].mxu1 }
 0xc3f   : > { %v2835_v18 = vpop.f32.mrb[25].mxu1  ;;  %v1985_v20 = vsel %vm1684_vm6, %v1979_v17, -inf }
 0xc40   : > { %1986 = vmax.xlane.f32.xlu1 %v1985_v20  ;;  %v1982_v21 = vpop.f32.mrb[26].mxu1 }
 0xc41   : > { %v2836_v24 = vpop.f32.mrb[27].mxu1 }
 0xc46   : > { %v2126_v25 = vpop.f32.mrb[28].mxu1 }
 0xc47   : > { %v2847_v26 = vpop.f32.mrb[29].mxu1  ;;  %v2132_v27 = vsel %vm1684_vm6, %v2126_v25, -inf }
 0xc48   : > { %2133 = vmax.xlane.f32.xlu1 %v2132_v27  ;;  %v2129_v28 = vpop.f32.mrb[30].mxu1  ;;  %v2979_v26 = vld [vmem:[%s3641_s10 + $0x8] sm:$0xff]  }
 0xc49   : > { %v2848_v29 = vpop.f32.mrb[31].mxu1  ;;  %2858 = vmatpush3.bf16.msra.mxu1 %v2979_v26 }
 0xc4a   : > { %2871 = vmatprep.subr.bf16.mxu1 %v3092_v1 }
 0xcbd   : > { %v1687_v30 = vpop.xlane.xlu1 %1686 }
 0xcbe   : > { %v1688_v23 = vsub.f32 %v1678_v8, %v1687_v30 }
 0xcc0   : > { %v1689_v31 = vmul.f32 1.442695, %v1688_v23 }
 0xcc2   : > { %3008 = vpow2.f32 %v1689_v31 }
 0xcc5   : > { %v1840_v32 = vpop.xlane.xlu0 %1839 }
 0xcc6   : > { %v1841_v33 = vsub.f32 %v1832_v13, %v1840_v32 }
 0xcc8   : > { %v1842_v34 = vmul.f32 1.442695, %v1841_v33 }
 0xcca   : > { %3010 = vpow2.f32 %v1842_v34 }
 0xccc   : > { %v3009_v36 = vpop.eup %3008 }
 0xccd   : > { %v1987_v37 = vpop.xlane.xlu1 %1986  ;;  %v1691_v38 = vsel %vm1684_vm6, %v3009_v36, 0.0 }
 0xcce   : > { %v1988_v39 = vsub.f32 %v1979_v17, %v1987_v37  ;;  %1692 = vadd.xlane.f32.xlu0 %v1691_v38  ;;  %v2642_v38 = vld [vmem:[%s3642_s11] ss:$0 sm:$0xff] }
 0xcd0   : > { %v1989_v40 = vmul.f32 1.442695, %v1988_v39 }
 0xcd2   : > { %3012 = vpow2.f32 %v1989_v40 }
 0xcd4   : > { %v3011_v41 = vpop.eup %3010 }
 0xcd5   : > { %v1844_v42 = vsel %vm1684_vm6, %v3011_v41, 0.0  ;;  %v2134_v46 = vpop.xlane.xlu1 %2133 }
 0xcd6   : > { %1845 = vadd.xlane.f32.xlu1 %v1844_v42  ;;  %v2135_v47 = vsub.f32 %v2126_v25, %v2134_v46 }
 0xcd8   : > { %v2136_v48 = vmul.f32 1.442695, %v2135_v47 }
 0xcda   : > { %3014 = vpow2.f32 %v2136_v48 }
 0xcdc   : > { %v3013_v43 = vpop.eup %3012 }
 0xcdd   : > { %v1991_v44 = vsel %vm1684_vm6, %v3013_v43, 0.0 }
 0xcde   : > { %1992 = vadd.xlane.f32.xlu0 %v1991_v44 }
 0xce4   : > { %v3015_v50 = vpop.eup %3014 }
 0xce5   : > { %v2138_v51 = vsel %vm1684_vm6, %v3015_v50, 0.0 }
 0xce7   : > { %1850 = vrot.lane.b32.xlu1 %v1697_v45, %s3704_s5 }
 0xceb   : > { %1997 = vrot.lane.b32.xlu1 %v1697_v45, %s3705_s26  ;;  %s3710_s26 = smov 24  }
 0xcf4   : > { %1699 = vrot.lane.b32.xlu0 %v1697_v45, %s3706_s23  ;;  %s2664_s23 = sshll.u32 %s3245_s4, 7  ;;  %s3108_s4 = smov [#allocation2]  }
 0xcf5   : > { %s3588_s8 = scalar_lea.hbm %s3653_s22, %s2664_s23 }
 0xd0f   : > { %2139 = vadd.xlane.f32.xlu1 %v2138_v51 }
 0xd20   : > { %2144 = vrot.lane.b32.xlu1 %v1697_v45, %s3707_s25 }
 0xd5b   : > { %v1693_v52 = vpop.xlane.xlu0 %1692 }
 0xd5c   : > { %3016 = vrcp.f32 %v1693_v52  ;;  %v2980_v52 = vld [vmem:[%s3643_s12] sm:$0xff]  }
 0xd63   : > { %v1846_v53 = vpop.xlane.xlu1 %1845 }
 0xd64   : > { %3018 = vrcp.f32 %v1846_v53  ;;  %v2981_v53 = vld [vmem:[%s3643_s12 + $0x8] sm:$0xff]  }
 0xd66   : > { %v3017_v19 = vpop.eup %3016 }
 0xd67   : > { %v1695_v54 = vmul.f32 %v3017_v19, %v3009_v36  ;;  %v1851_v57 = vpop.permute.xlu1 %1850  ;;  %v2983_v19 = vld [vmem:[%s3645_s14 + $0x8] sm:$0xff]  }
 0xd68   : > { %v1856_v60 = vsel %vm1704_vm7, %v1851_v57, 0 }
 0xd69   : > { %v1696_v58 = vpack.c.bf16 %v1695_v54, %v1695_v54  ;;  %v2985_v54 = vld [vmem:[%s3645_s14 + $0x18] sm:$0xff]  }
 0xd6b   : > { %v1993_v22 = vpop.xlane.xlu0 %1992  ;;  %v1998_v61 = vpop.permute.xlu1 %1997 }
 0xd6c   : > { %3020 = vrcp.f32 %v1993_v22  ;;  %v2003_v0 = vsel %vm1704_vm7, %v1998_v61, 0  ;;  %v2984_v22 = vld [vmem:[%s3645_s14 + $0x10] sm:$0xff]  }
 0xd6e   : > { %v3019_v59 = vpop.eup %3018 }
 0xd6f   : > { %v1700_v55 = vpop.permute.xlu0 %1699  ;;  %v1848_v49 = vmul.f32 %v3019_v59, %v3011_v41 }
 0xd70   : > { %v1706_v56 = vsel %vm1704_vm7, %v1700_v55, 0  ;;  %v2986_v55 = vld [vmem:[%s3645_s14 + $0x20] sm:$0xff]  }
 0xd71   : > { %2814 = vmatpush3.bf16.msra.mxu0 %v1706_v56  ;;  %v1849_v62 = vpack.c.bf16 %v1848_v49, %v1848_v49  ;;  %v2987_v56 = vld [vmem:[%s3645_s14 + $0x28] sm:$0xff]   ;;  %v2646_v49 = vld [vmem:[%s3649_s18] ss:$0 sm:$0xff] }
 0xd72   : > { %2825 = vmatprep.subr.bf16.mxu0 %v3092_v1 }
 0xd74   : > { %2816 = vmatmul.mubr.msk.bf16.vlgmr.msra.gmra.mrb[32].mxu0 %vm1684_vm6, %v1696_v58 }
 0xd75   : > { %2826 = vmatpush3.bf16.msra.mxu0 %v1856_v60  ;;  %2827 = vmatprep.mubr.msk.bf16.mxu0 %vm3093_vm0, %v3092_v1 }
 0xd76   : > { %2837 = vmatprep.subr.bf16.mxu0 %v3092_v1  ;;  %v3021_v63 = vpop.eup %3020 }
 0xd77   : > { %v1995_v2 = vmul.f32 %v3021_v63, %v3013_v43 }
 0xd79   : > { %v1996_v4 = vpack.c.bf16 %v1995_v2, %v1995_v2 }
 0xd7c   : > { %2828 = vmatmul.mubr.msk.bf16.vlgmr.msra.gmra.mrb[36].mxu0 %vm1684_vm6, %v1849_v62  ;;  %v2647_v62 = vld [vmem:[%s3650_s19] ss:$0 sm:$0xff] }
 0xd7d   : > { %2838 = vmatpush3.bf16.msra.mxu0 %v2003_v0  ;;  %2839 = vmatprep.mubr.msk.bf16.mxu0 %vm3093_vm0, %v3092_v1 }
 0xd7e   : > { %2849 = vmatprep.subr.bf16.mxu0 %v3092_v1 }
 0xd84   : > { %2840 = vmatmul.mubr.msk.bf16.vlgmr.msra.gmra.mrb[40].mxu0 %vm1684_vm6, %v1996_v4  ;;  %v2988_v4 = vld [vmem:[%s3645_s14 + $0x30] sm:$0xff]  }
 0xd85   : > { %2851 = vmatprep.mubr.msk.bf16.mxu0 %vm3093_vm0, %v3092_v1 }
 0xd9c   : > { %v2140_v5 = vpop.xlane.xlu1 %2139 }
 0xd9d   : > { %3022 = vrcp.f32 %v2140_v5  ;;  %v2989_v5 = vld [vmem:[%s3645_s14 + $0x38] sm:$0xff]  }
 0xda0   : > { %v2145_v6 = vpop.permute.xlu1 %2144 }
 0xda1   : > { %v2150_v7 = vsel %vm1704_vm7, %v2145_v6, 0  ;;  %v2648_v6 = vld [vmem:[%s3644_s13] ss:$0 sm:$0xff] }
 0xda2   : > { %2850 = vmatpush3.bf16.msra.mxu0 %v2150_v7 }
 0xda3   : > { %2863 = vmatprep.subr.bf16.mxu0 %v3092_v1 }
 0xda7   : > { %v3023_v8 = vpop.eup %3022 }
 0xda8   : > { %v2142_v9 = vmul.f32 %v3023_v8, %v3015_v50 }
 0xdaa   : > { %v2143_v10 = vpack.c.bf16 %v2142_v9, %v2142_v9 }
 0xdac   : > { %2852 = vmatmul.mubr.msk.bf16.vlgmr.msra.gmra.mrb[44].mxu0 %vm1684_vm6, %v2143_v10 }
 0xdad   : > { %2867 = vmatprep.mubr.msk.bf16.mxu0 %vm3093_vm0, %v3092_v1  ;;  %2864 = vmatpush3.bf16.msra.mxu0 %v2980_v52 }
 0xdae   : > { %2865 = vmatprep.subr.bf16.mxu0 %v3092_v1 }
 0xdb1   : > { %2866 = vmatpush3.bf16.msra.mxu0 %v2981_v53 }
 0xe47   : > { %v1742_v11 = vpop.f32.mrb[32].mxu0 }
 0xe48   : > { %v2817_v12 = vpop.f32.mrb[33].mxu0 }
 0xe49   : > { %v1745_v13 = vpop.f32.mrb[34].mxu0 }
 0xe4a   : > { %v2818_v14 = vpop.f32.mrb[35].mxu0 }
 0xe4f   : > { %v1892_v16 = vpop.f32.mrb[36].mxu0 }
 0xe50   : > { %2193 = vrot.lane.b32.xlu0 %v1892_v16, %s3708_s2  ;;  %v2829_v3 = vpop.f32.mrb[37].mxu0  ;;  %s2604_s2 = sshll.u32 %s687_s0, 3 }
 0xe51   : > { %v1895_v17 = vpop.f32.mrb[38].mxu0  ;;  %s689_s25 = scalar_lea.vmem [#allocation2], %s2604_s2  ;;  %s3032_s2 = sshll.u32 %s3108_s4, 4  ;;  %s3033_s2 = int_to_ptr.vmem [resolvable:$false] %s3032_s2 }
 0xe52   : > { %v2830_v18 = vpop.f32.mrb[39].mxu0  ;;  %s2529_s24 = sshll.u32 %s689_s25, 4  ;;  %s3034_s5 = scalar_lea.vmem %s3033_s2, 256  ;;  %s3590_s24 = int_to_ptr.vmem [resolvable:$true] %s2529_s24 }
 0xe53   : > { %s3028_s29 = scalar_lea.vmem %s3590_s24, 128  ;;  %p3035_p0 = scmp.lt.s32.totalorder %s3590_s24, %s3033_s2 }
 0xe54   : > { %p3029_p11 = scmp.ne.s32.totalorder %s3590_s24, %s3028_s29  ;;  %p3036_p1 = scmp.lt.s32.totalorder %s3034_s5, %s3028_s29 }
 0xe56   : > { %p3030_p12 = pnand %p3029_p11, %p3262_p5  ;;  %p3037_p2 = por %p3036_p1, %p3035_p0 }
 0xe57   : > { %v2039_v20 = vpop.f32.mrb[40].mxu0 }
 0xe58   : > { %2197 = vrot.lane.b32.xlu1 %v2039_v20, %s3709_s27  ;;  %v2841_v21 = vpop.f32.mrb[41].mxu0  ;;  %s2516_s27 = scalar_lea.sflag [#allocation3], %s687_s0  ;;  %p3031_p13 = pneg %p3030_p12 }
 0xe59   : > { %v2042_v24 = vpop.f32.mrb[42].mxu0 }
 0xe5a   : > { %v2842_v25 = vpop.f32.mrb[43].mxu0  ;;  %p3038_p3 = pnand %p3037_p2, %p3031_p13 }
 0xe7f   : > { %v2186_v27 = vpop.f32.mrb[44].mxu0 }
 0xe80   : > { %2201 = vrot.lane.b32.xlu0 %v2186_v27, %s3710_s26  ;;  %v2853_v28 = vpop.f32.mrb[45].mxu0 }
 0xe81   : > { %v2189_v29 = vpop.f32.mrb[46].mxu0 }
 0xe82   : > { %v2854_v30 = vpop.f32.mrb[47].mxu0 }
 0xec2   : > { %v2194_v23 = vpop.permute.xlu0 %2193 }
 0xec3   : > { %v2204_v32 = vsel %vm810_vm3, %v1742_v11, %v2194_v23 }
 0xeca   : > { %v2198_v31 = vpop.permute.xlu1 %2197 }
 0xecb   : > { %v2205_v33 = vsel %vm1366_vm4, %v2204_v32, %v2198_v31  ;;  %v2661_v31 = vld [vmem:[%s3651_s20] ss:$0 sm:$0xff] }
 0xef2   : > { %v2202_v34 = vpop.permute.xlu0 %2201 }
 0xef3   : > { %v2206_v36 = vsel %vm1368_vm5, %v2205_v33, %v2202_v34  ;;  %v2662_v33 = vld [vmem:[%s3652_s21] ss:$0 sm:$0xff] }
 0xef4   : > { %v2211_v37 = vpack.c.bf16 %v2206_v36, %v2206_v36 }
 0xef6   : > { %2860 = vmatmul.mubr.msk.bf16.vlgmr.msra.gmra.mrb[32].mxu1 %vm727_vm1, %v2211_v37 }
 0xef7   : > { %2887 = vmatprep.mubr.msk.bf16.mxu1 %vm3093_vm0, %v3092_v1 }
 0xfc9   : > { %v2268_v39 = vpop.f32.mrb[32].mxu1 }
 0xfca   : > { %v2269_v40 = vadd.f32 %v2642_v38, %v2268_v39  ;;  %v2861_v41 = vpop.f32.mrb[33].mxu1 }
 0xfcb   : > { %v2271_v42 = vpop.f32.mrb[34].mxu1 }
 0xfcc   : > { %v2862_v43 = vpop.f32.mrb[35].mxu1  ;;  %v2274_v44 = vadd.f32 %v2269_v40, %v3432_v35  ;;  %v2982_v35 = vld [vmem:[%s3645_s14] sm:$0xff]  }
 0xfcd   : > { %2872 = vmatpush3.bf16.msra.mxu1 %v2982_v35 }
 0xfce   : > { %v2277_v45 = vsel %vm727_vm1, %v2274_v44, 0.0  ;;  %2873 = vmatprep.subr.bf16.mxu1 %v3092_v1 }
 0xfcf   : > { %2278 = vadd.xlane.f32.xlu1 %v2277_v45 }
 0xfd1   : > { %2874 = vmatpush3.bf16.msra.mxu1 %v2983_v19 }
 0xfd2   : > { %2875 = vmatprep.subr.bf16.mxu1 %v3092_v1 }
 0xfd5   : > { %2876 = vmatpush3.bf16.msra.mxu1 %v2984_v22 }
 0xfd6   : > { %2877 = vmatprep.subr.bf16.mxu1 %v3092_v1 }
 0xfd9   : > { %2878 = vmatpush3.bf16.msra.mxu1 %v2985_v54 }
 0xfda   : > { %2879 = vmatprep.subr.bf16.mxu1 %v3092_v1 }
 0xfdd   : > { %2880 = vmatpush3.bf16.msra.mxu1 %v2986_v55 }
 0xfde   : > { %2881 = vmatprep.subr.bf16.mxu1 %v3092_v1 }
 0xfe1   : > { %2882 = vmatpush3.bf16.msra.mxu1 %v2987_v56 }
 0xfe2   : > { %2883 = vmatprep.subr.bf16.mxu1 %v3092_v1 }
 0xfe5   : > { %2884 = vmatpush3.bf16.msra.mxu1 %v2988_v4 }
 0xfe6   : > { %2885 = vmatprep.subr.bf16.mxu1 %v3092_v1  ;;  %v2652_v1 = vld [vmem:[%s3646_s15] ss:$0 sm:$0xff] }
 0xfe9   : > { %2886 = vmatpush3.bf16.msra.mxu1 %v2989_v5 }
0x105c   : > { %v2279_v46 = vpop.xlane.xlu1 %2278 }
0x105d   : > { %v2280_v47 = vmul.f32 0.03125, %v2279_v46 }
0x105f   : > { %v2281_v48 = vsub.f32 %v2274_v44, %v2280_v47 }
0x1061   : > { %v2282_v50 = vmul.f32 %v2281_v48, %v2281_v48 }
0x1063   : > { %v2283_v51 = vsel %vm727_vm1, %v2282_v50, 0.0 }
0x1064   : > { %2284 = vadd.xlane.f32.xlu0 %v2283_v51 }
0x10f1   : > { %v2285_v57 = vpop.xlane.xlu0 %2284 }
0x10f2   : > { %v2286_v58 = vmul.f32 0.03125, %v2285_v57 }
0x10f4   : > { %v2287_v59 = vadd.f32 1e-05, %v2286_v58 }
0x10f6   : > { %3024 = vrsqrt.f32 %v2287_v59 }
0x1100   : > { %v3025_v60 = vpop.eup %3024 }
0x1101   : > { %v2289_v61 = vmul.f32 %v3025_v60, %v2281_v48 }
0x1103   : > { %v2296_v63 = vmul.f32 %v2646_v49, %v2289_v61 }
0x1105   : > { %v2303_v0 = vadd.f32 %v2647_v62, %v2296_v63 }
0x1107   : > { %v2308_v2 = vpack.c.bf16 %v2303_v0, %v2303_v0 }
0x1109   : > { %2868 = vmatmul.mubr.msk.bf16.vlgmr.msra.gmra.mrb[48].mxu0 %vm727_vm1, %v2308_v2 }
0x11dc   : > { %v2365_v7 = vpop.f32.mrb[48].mxu0 }
0x11dd   : > { %v2366_v8 = vadd.f32 %v2648_v6, %v2365_v7  ;;  %v2869_v9 = vpop.f32.mrb[49].mxu0 }
0x11de   : > { %v2368_v10 = vpop.f32.mrb[50].mxu0 }
0x11df   : > { %v2371_v11 = vmax.f32 %v2366_v8, 0.0  ;;  %v2870_v12 = vpop.f32.mrb[51].mxu0 }
0x11e1   : > { %v2388_v13 = vpack.c.bf16 %v2371_v11, %v2371_v11 }
0x11e3   : > { %2888 = vmatmul.mubr.bf16.vlgmr.msra.gmra.mrb[36].mxu1 %v2388_v13 }
0x12b6   : > { %v2478_v14 = vpop.f32.mrb[36].mxu1 }
0x12b7   : > { %v2479_v15 = vadd.f32 %v2652_v1, %v2478_v14  ;;  %v2889_v16 = vpop.f32.mrb[37].mxu1 }
0x12b8   : > { %v2481_v3 = vpop.f32.mrb[38].mxu1 }
0x12b9   : > { %v2890_v17 = vpop.f32.mrb[39].mxu1  ;;  %v2484_v18 = vadd.f32 %v2479_v15, %v2303_v0 }
0x12bb   : > { %v2487_v20 = vsel %vm727_vm1, %v2484_v18, 0.0 }
0x12bc   : > { %2488 = vadd.xlane.f32.xlu0 %v2487_v20 }
0x1349   : > { %v2489_v21 = vpop.xlane.xlu0 %2488 }
0x134a   : > { %v2490_v24 = vmul.f32 0.03125, %v2489_v21 }
0x134c   : > { %v2491_v25 = vsub.f32 %v2484_v18, %v2490_v24 }
0x134e   : > { %v2492_v26 = vmul.f32 %v2491_v25, %v2491_v25 }
0x1350   : > { %v2493_v27 = vsel %vm727_vm1, %v2492_v26, 0.0 }
0x1351   : > { %2494 = vadd.xlane.f32.xlu0 %v2493_v27 }
0x13de   : > { %v2495_v28 = vpop.xlane.xlu0 %2494 }
0x13df   : > { %v2496_v29 = vmul.f32 0.03125, %v2495_v28 }
0x13e1   : > { %v2497_v30 = vadd.f32 1e-05, %v2496_v29 }
0x13e3   : > { %3026 = vrsqrt.f32 %v2497_v30 }
0x13ed   : > { %v3027_v23 = vpop.eup %3026 }
0x13ee   : > { %v2499_v32 = vmul.f32 %v3027_v23, %v2491_v25 }
0x13f0   : > { %v2506_v34 = vmul.f32 %v2661_v31, %v2499_v32 }
0x13f2   : > { %v2513_v36 = vadd.f32 %v2662_v33, %v2506_v34 }
0x13f4   : > { %2514 = vst.msk [vmem:[%s689_s25] sm:$0xff] %vm727_vm1, %v2513_v36 }
0x13f5   : > { %3041 = shalt.err (!%p3038_p3)
}
0x13f6   : > { %s3042_s7 = scalar_lea.hbm %s3588_s8, 128  ;;  %s3046_s26 = scalar_lea.hbm %s3653_s22, 256 }
0x13f7   : > { %p3043_p4 = scmp.ne.s32.totalorder %s3588_s8, %s3042_s7  ;;  %p3047_p9 = scmp.lt.u32.totalorder %s3588_s8, %s3653_s22 }
0x13f8   : > { %p3048_p10 = scmp.lt.u32.totalorder %s3046_s26, %s3042_s7  ;;  %p3050_p12 = scmp.lt.u32.totalorder %s3042_s7, %s3588_s8 }
0x13f9   : > { %p3044_p7 = pnand %p3043_p4, %p3262_p5 }
0x13fa   : > { %p3049_p11 = por %p3048_p10, %p3047_p9 }
0x13fb   : > { %p3045_p8 = pneg %p3044_p7 }
0x13fc   : > { %p3051_p13 = por %p3050_p12, %p3049_p11 }
0x13fe   : > { %p3052_p0 = pnand %p3051_p13, %p3045_p8 }
0x1400   : > { %3055 = shalt.err (!%p3052_p0)
}
0x1401   : > { %2891 = dma.vmem_to_hbm [thread:$0]  (%p3262_p5), %s3590_s24, 128, %s3588_s8, %s2516_s27  }
0x1402 PF: > { %p2897_p1 = scmp.ge.s32.totalorder %s3090_s30, 2  ;;  %s2541_s4 = sand.u32 1, %s3078_s3  }
0x1403   : > { %s2542_s2 = scalar_lea.sflag [#allocation3], %s2541_s4 }
0x1404   : > { %p2894_p2 = pnand %p2897_p1, %p3266_p6 }
0x1406   : > { %3073 = dma.done.wait (!%p2894_p2), %s2542_s2, 128  }
0x1407   : > { %3075 = vsyncadd (!%p2894_p2), %s2542_s2, 4294967168  ;;  %s3712_s30 = sld [smem:[#allocation6_spill]]  ;;  %s3713_s5 = sld [smem:[#allocation5_spill]] }
0x1408   : > { %s3714_s29 = sld [smem:[#allocation7_spill]]  ;;  %s3715_s3 = smov %s3082_s28 }
0x140d   : > { %p32_p3 = scmp.ge.s32.totalorder %s3712_s30, 4   ;;  %s3716_s28 = smov %s3713_s5 }
0x140f   :  { %34 = sbr.rel (!%p32_p3) target bundleno = 13 (0xd), region = 146 }
0x1416   :  { %2547 = vsyncpa [#allocation3], 1 }
0x1417   :  { %2549 = vsyncpa [#allocation3 + $0x1], 1 }

</bundles_post_ra>
